<compile_context>
chip_gen: v7x
topology: tpu7x:2x2x1
jax: 0.10.0
libtpu: 0.0.40
codegen_flags: <defaults>
</compile_context>

<pallas_src>
import functools

import jax
import jax.numpy as jnp
from jax.experimental import pallas as pl
from jax.experimental.pallas import tpu as pltpu

_EPS = 1e-8
_NEG_INF = -1e30


def _layernorm(v, g, b):
    mu = jnp.mean(v, axis=-1, keepdims=True)
    var = jnp.mean((v - mu) ** 2, axis=-1, keepdims=True)
    return (v - mu) * jax.lax.rsqrt(var + _EPS) * g + b


# ----------------------------------------------------------------------------
# Fused transformer stack + final-LN + logits kernel
#   grid = (batch_tiles, layers); layer axis "arbitrary", activation resident in VMEM
# ----------------------------------------------------------------------------
def _sasrec_fused_kernel(x_ref,
                         ln1g_ref, ln1b_ref,
                         wq_ref, bq_ref, wkv_ref, bkv_ref, wo_ref, bo_ref,
                         ln2g_ref, ln2b_ref,
                         w1_ref, b1_ref, w2_ref, b2_ref,
                         lnfg_ref, lnfb_ref, pos_ref, neg_ref,
                         pos_out_ref, neg_out_ref,
                         acc_ref, attn_ref, *, num_heads):
    layer = pl.program_id(1)
    n_layers = pl.num_programs(1)
    Bt, T, D = x_ref.shape
    P = Bt * T
    Dh = D // num_heads
    bf16 = jnp.bfloat16
    f32 = jnp.float32

    # Load the input activation once per batch tile; it stays resident across layers.
    @pl.when(layer == 0)
    def _():
        acc_ref[...] = x_ref[...].reshape(P, D)

    x = acc_ref[...]                                            # (P, D) f32

    # ---- attention sub-block: Q from LN(x); K, V from the raw x (SASRec quirk) ----
    q_in = _layernorm(x, ln1g_ref[layer], ln1b_ref[layer])

    q = jnp.dot(q_in.astype(bf16), wq_ref[layer],
                preferred_element_type=f32) + bq_ref[layer]
    kv = jnp.dot(x.astype(bf16), wkv_ref[layer],
                 preferred_element_type=f32) + bkv_ref[layer]

    q3 = q.reshape(Bt, T, D)
    kv3 = kv.reshape(Bt, T, 2 * D)

    row = jax.lax.broadcasted_iota(jnp.int32, (T, T), 0)
    col = jax.lax.broadcasted_iota(jnp.int32, (T, T), 1)
    disallow = (col > row)[None]                                # (1, T, T) causal mask

    scale = 1.0 / (Dh ** 0.5)
    # TODO(synk): when Dh < 128 the per-head lane-offset value slices below may cost a
    # relayout each; if a bundle dump shows the VALU/XLU slot binding, pad heads to 128
    # lanes in the QKV weight layout instead.
    for h in range(num_heads):                                  # heads are few; static unroll
        qh = q3[:, :, h * Dh:(h + 1) * Dh].astype(bf16)
        kh = kv3[:, :, h * Dh:(h + 1) * Dh].astype(bf16)
        vh = kv3[:, :, D + h * Dh:D + (h + 1) * Dh].astype(bf16)
        s = jnp.einsum("bqd,bkd->bqk", qh, kh, preferred_element_type=f32) * scale
        s = jnp.where(disallow, _NEG_INF, s)
        m = jnp.max(s, axis=-1, keepdims=True)
        e = jnp.exp(s - m)
        p = e * pl.reciprocal(jnp.sum(e, axis=-1, keepdims=True), approx=True)
        oh = jnp.einsum("bqk,bkd->bqd", p.astype(bf16), vh, preferred_element_type=f32)
        # Stage this head's output at its lane offset; one full-K W_o matmul below.
        attn_ref[:, h * Dh:(h + 1) * Dh] = oh.reshape(P, Dh).astype(bf16)

    mha = jnp.dot(attn_ref[...], wo_ref[layer],
                  preferred_element_type=f32) + bo_ref[layer]
    seqs = q_in + mha                                           # residual on the LN'ed Q

    # ---- point-wise FFN (Conv1d k=1 == matmul); residual on the LN output ----
    y = _layernorm(seqs, ln2g_ref[layer], ln2b_ref[layer])
    h1 = jnp.dot(y.astype(bf16), w1_ref[layer], preferred_element_type=f32) + b1_ref[layer]
    h1 = jnp.maximum(h1, 0.0)
    ffn = jnp.dot(h1.astype(bf16), w2_ref[layer], preferred_element_type=f32) + b2_ref[layer]
    new_x = ffn + y

    acc_ref[...] = new_x                                        # resident for next layer

    # ---- fused epilogue: final LayerNorm + pos/neg logits (no HBM round trip) ----
    @pl.when(layer == n_layers - 1)
    def _():
        feats = _layernorm(new_x, lnfg_ref[...], lnfb_ref[...])            # (P, D)
        pos = pos_ref[...].reshape(P, D)
        pos_out_ref[...] = jnp.sum(feats * pos, axis=-1,
                                   keepdims=True).reshape(Bt, T, 1)
        N = neg_ref.shape[2]
        neg = neg_ref[...].reshape(P, N, D)
        neg_out_ref[...] = jnp.sum(feats.reshape(P, 1, D) * neg,
                                   axis=-1).reshape(Bt, T, N)


def _full_spec(arr):
    """Whole array as one VMEM-resident block (constant index_map => DMA'd once)."""
    nd = arr.ndim
    return pl.BlockSpec(arr.shape, lambda b, l, _nd=nd: (0,) * _nd)


# ----------------------------------------------------------------------------
# Generation-aware VMEM sizing
# ----------------------------------------------------------------------------
def _tpu_vmem_capacity_bytes():
    try:
        info = pltpu.get_tpu_info()
        return int(getattr(info, "vmem_capacity_bytes", 64 * 1024 * 1024))
    except Exception:                                   # no TPU info at trace time
        return 64 * 1024 * 1024                         # conservative (v7x-sized)


def _pick_block_b(B, T, D, N, weight_bytes, vmem_limit, two_tensorcores):
    # Per batch-row f32 working set (conservative):
    #   2x dbl-buffered x block + pos block + N neg block, acc scratch, bf16 attn scratch,
    #   ~16 (T,D) f32 temporaries inside the layer body, ~4 (T,T) score temporaries,
    #   the (N,T,D) final product temp and the tiny output blocks.
    per_row = ((2 + 2 + 2 * N) * T * D + T * D + 16 * T * D
               + 4 * T * T + N * T * D + 2 * T * (N + 1)) * 4 + T * D * 2
    budget = max(vmem_limit - 2 * weight_bytes - (6 << 20), 1 << 20)
    bt = max(1, min(B, budget // max(per_row, 1)))
    if two_tensorcores and B >= 2:
        bt = min(bt, max(1, B // 2))     # keep >=2 batch tiles so both TCs get work
    while B % bt:                        # TODO(synk): pad B instead for prime batch sizes
        bt -= 1
    return int(bt)


# ----------------------------------------------------------------------------
# Fused pallas_call wrapper
# ----------------------------------------------------------------------------
_WEIGHT_NAMES = ["ln1_g", "ln1_b", "wq", "bq", "wkv", "bkv", "wo", "bo",
                 "ln2_g", "ln2_b", "w1", "b1", "w2", "b2", "ln_f_g", "ln_f_b"]


def sasrec_fused(x, pos_embs, neg_embs, params, num_heads, *, block_b=None):
    B, T, D = x.shape
    N = neg_embs.shape[2]
    L = params["wq"].shape[0]
    assert D % num_heads == 0 and T % 8 == 0

    weight_args = [params[n] for n in _WEIGHT_NAMES]
    weight_bytes = sum(int(a.size) * a.dtype.itemsize for a in weight_args)

    vmem_cap = _tpu_vmem_capacity_bytes()
    vmem_limit = int(min(vmem_cap * 0.85, vmem_cap - (12 << 20)))
    two_tc = vmem_cap <= (80 << 20)                       # 64 MiB parts (v7x) have 2 TCs
    if block_b is None:
        block_b = _pick_block_b(B, T, D, N, weight_bytes, vmem_limit, two_tc)

    x_spec = pl.BlockSpec((block_b, T, D), lambda b, l: (b, 0, 0))
    pos_spec = pl.BlockSpec((block_b, T, D), lambda b, l: (b, 0, 0))
    neg_spec = pl.BlockSpec((block_b, T, N, D), lambda b, l: (b, 0, 0, 0))
    in_specs = ([x_spec] + [_full_spec(a) for a in weight_args] + [pos_spec, neg_spec])

    out_shape = (jax.ShapeDtypeStruct((B, T, 1), jnp.float32),
                 jax.ShapeDtypeStruct((B, T, N), jnp.float32))
    out_specs = (pl.BlockSpec((block_b, T, 1), lambda b, l: (b, 0, 0)),
                 pl.BlockSpec((block_b, T, N), lambda b, l: (b, 0, 0)))

    kernel = functools.partial(_sasrec_fused_kernel, num_heads=num_heads)
    pos_out, neg_out = pl.pallas_call(
        kernel,
        out_shape=out_shape,
        grid=(B // block_b, L),
        in_specs=in_specs,
        out_specs=out_specs,
        scratch_shapes=[pltpu.VMEM((block_b * T, D), jnp.float32),   # resident activation
                        pltpu.VMEM((block_b * T, D), jnp.bfloat16)], # staged head outputs
        compiler_params=pltpu.CompilerParams(
            dimension_semantics=("parallel", "arbitrary"),
            vmem_limit_bytes=vmem_limit),
    )(x, *weight_args, pos_embs, neg_embs)
    return pos_out[..., 0], neg_out


# ----------------------------------------------------------------------------
# SASRec forward (embedding glue in plain JAX, dense hot path in the Pallas kernel)
# ----------------------------------------------------------------------------
def sasrec_forward(params, log_seqs, pos_seqs, neg_seqs, num_heads, *, block_b=None):
    item_emb = params["item_emb"]
    pos_emb = params["pos_emb"]
    D = item_emb.shape[1]
    B, T = log_seqs.shape

    # TODO(synk): item/position embedding gathers stay in plain JAX (data-dependent
    # gather over the full table); only the dense transformer path is a Pallas kernel.
    seqs = jnp.take(item_emb, log_seqs, axis=0) * (D ** 0.5)
    positions = (jnp.arange(1, T + 1, dtype=jnp.int32)[None, :]
                 * (log_seqs != 0).astype(jnp.int32))          # 0 where padded
    seqs = seqs + jnp.take(pos_emb, positions, axis=0)
    # emb_dropout / per-layer dropouts are identity in eval mode.

    pos_embs = jnp.take(item_emb, pos_seqs, axis=0)
    neg_embs = jnp.take(item_emb, neg_seqs, axis=0)

    # Pad T to a multiple of 8 (sublane). Causal masking makes the extra rows inert;
    # they are sliced off below, so this is exact.
    T_pad = ((T + 7) // 8) * 8
    if T_pad != T:
        p = T_pad - T
        seqs = jnp.pad(seqs, ((0, 0), (0, p), (0, 0)))
        pos_embs = jnp.pad(pos_embs, ((0, 0), (0, p), (0, 0)))
        neg_embs = jnp.pad(neg_embs, ((0, 0), (0, p), (0, 0), (0, 0)))
    # TODO(synk): if D < 128, lanes are under-filled; padding D would need a masked
    # LayerNorm, so it is left to the caller's model config.

    pos_logits, neg_logits = sasrec_fused(seqs, pos_embs, neg_embs, params,
                                          num_heads, block_b=block_b)
    return pos_logits[:, :T], neg_logits[:, :T]


# ----------------------------------------------------------------------------
# Deterministic parameter init (stacked per-layer weights, bf16 matmul weights)
# ----------------------------------------------------------------------------
def init_params(key, item_num, maxlen, hidden, num_blocks):
    D, L = hidden, num_blocks
    keys = jax.random.split(key, 16)
    item_emb = 0.02 * jax.random.normal(keys[0], (item_num + 1, D), jnp.float32)
    item_emb = item_emb.at[0].set(0.0)       # padding_idx=0
    pos_emb = 0.02 * jax.random.normal(keys[1], (maxlen + 1, D), jnp.float32)
    pos_emb = pos_emb.at[0].set(0.0)         # padding_idx=0

    def w(k, shape):
        return (0.05 * jax.random.normal(k, shape, jnp.float32)).astype(jnp.bfloat16)

    def b(k, shape):
        return 0.02 * jax.random.normal(k, shape, jnp.float32)

    return dict(
        item_emb=item_emb, pos_emb=pos_emb,
        ln1_g=1.0 + 0.1 * jax.random.normal(keys[2], (L, 1, D), jnp.float32),
        ln1_b=0.05 * jax.random.normal(keys[3], (L, 1, D), jnp.float32),
        wq=w(keys[4], (L, D, D)), bq=b(keys[5], (L, 1, D)),
        wkv=w(keys[6], (L, D, 2 * D)), bkv=b(keys[7], (L, 1, 2 * D)),   # fused K|V
        wo=w(keys[8], (L, D, D)), bo=b(keys[9], (L, 1, D)),
        ln2_g=1.0 + 0.1 * jax.random.normal(keys[10], (L, 1, D), jnp.float32),
        ln2_b=0.05 * jax.random.normal(keys[11], (L, 1, D), jnp.float32),
        w1=w(keys[12], (L, D, D)), b1=b(keys[13], (L, 1, D)),   # Conv1d k=1 #1, (in,out)
        w2=w(keys[14], (L, D, D)), b2=b(keys[15], (L, 1, D)),   # Conv1d k=1 #2, (in,out)
        ln_f_g=jnp.ones((1, D), jnp.float32),
        ln_f_b=jnp.zeros((1, D), jnp.float32),
    )


# ----------------------------------------------------------------------------
# Pure-JAX reference (same bf16-matmul math) for the correctness check
# ----------------------------------------------------------------------------
def _ref_forward(params, log_seqs, pos_seqs, neg_seqs, num_heads):
    item_emb, pos_emb = params["item_emb"], params["pos_emb"]
    D = item_emb.shape[1]
    B, T = log_seqs.shape
    Dh = D // num_heads
    bf16 = jnp.bfloat16

    def mm(a, w):
        return jnp.dot(a.astype(bf16), w.astype(bf16),
                       preferred_element_type=jnp.float32)

    def ln(v, g, b):
        mu = v.mean(-1, keepdims=True)
        var = ((v - mu) ** 2).mean(-1, keepdims=True)
        return (v - mu) * jax.lax.rsqrt(var + _EPS) * g + b

    seqs = jnp.take(item_emb, log_seqs, axis=0) * (D ** 0.5)
    positions = (jnp.arange(1, T + 1, dtype=jnp.int32)[None, :]
                 * (log_seqs != 0).astype(jnp.int32))
    seqs = seqs + jnp.take(pos_emb, positions, axis=0)
    mask = jnp.triu(jnp.ones((T, T), bool), k=1)

    L = params["wq"].shape[0]
    for l in range(L):
        q_in = ln(seqs, params["ln1_g"][l, 0], params["ln1_b"][l, 0])
        q = mm(q_in.reshape(B * T, D), params["wq"][l]).reshape(B, T, D) + params["bq"][l, 0]
        kv = mm(seqs.reshape(B * T, D), params["wkv"][l]).reshape(B, T, 2 * D) + params["bkv"][l, 0]
        k, v = kv[..., :D], kv[..., D:]
        qh = q.reshape(B, T, num_heads, Dh).transpose(0, 2, 1, 3)
        kh = k.reshape(B, T, num_heads, Dh).transpose(0, 2, 1, 3)
        vh = v.reshape(B, T, num_heads, Dh).transpose(0, 2, 1, 3)
        s = jnp.einsum("bhtd,bhsd->bhts", qh.astype(bf16), kh.astype(bf16),
                       preferred_element_type=jnp.float32) / (Dh ** 0.5)
        s = jnp.where(mask[None, None], _NEG_INF, s)
        p = jax.nn.softmax(s, axis=-1)
        a = jnp.einsum("bhts,bhsd->bhtd", p.astype(bf16), vh.astype(bf16),
                       preferred_element_type=jnp.float32)
        a = a.transpose(0, 2, 1, 3).reshape(B, T, D)
        mha = mm(a.reshape(B * T, D), params["wo"][l]).reshape(B, T, D) + params["bo"][l, 0]
        seqs = q_in + mha
        y = ln(seqs, params["ln2_g"][l, 0], params["ln2_b"][l, 0])
        h1 = jnp.maximum(mm(y.reshape(B * T, D), params["w1"][l]).reshape(B, T, D)
                         + params["b1"][l, 0], 0.0)
        ffn = mm(h1.reshape(B * T, D), params["w2"][l]).reshape(B, T, D) + params["b2"][l, 0]
        seqs = ffn + y

    feats = ln(seqs, params["ln_f_g"][0], params["ln_f_b"][0])
    pe = jnp.take(item_emb, pos_seqs, axis=0)
    ne = jnp.take(item_emb, neg_seqs, axis=0)
    return (feats * pe).sum(-1), (feats[:, :, None, :] * ne).sum(-1)


# ----------------------------------------------------------------------------
if __name__ == "__main__":
    B, T, D, H, NUM_BLOCKS, N_NEG = 4, 16, 64, 2, 2, 3
    ITEM_NUM = 100

    key = jax.random.PRNGKey(0)
    pkey, k1, k2, k3 = jax.random.split(key, 4)
    params = init_params(pkey, ITEM_NUM, T, D, NUM_BLOCKS)

    log_seqs = jax.random.randint(k1, (B, T), 0, ITEM_NUM + 1, dtype=jnp.int32)
    log_seqs = log_seqs.at[:, :2].set(0)   # exercise padding_idx / position masking
    pos_seqs = jax.random.randint(k2, (B, T), 1, ITEM_NUM + 1, dtype=jnp.int32)
    neg_seqs = jax.random.randint(k3, (B, T, N_NEG), 1, ITEM_NUM + 1, dtype=jnp.int32)

    pos_logits, neg_logits = sasrec_forward(params, log_seqs, pos_seqs, neg_seqs, H)
    jax.block_until_ready((pos_logits, neg_logits))

    ref_pos, ref_neg = _ref_forward(params, log_seqs, pos_seqs, neg_seqs, H)
    assert pos_logits.shape == (B, T) and neg_logits.shape == (B, T, N_NEG)
    assert jnp.allclose(pos_logits, ref_pos, atol=1e-2, rtol=1e-2), \
        float(jnp.max(jnp.abs(pos_logits - ref_pos)))
    assert jnp.allclose(neg_logits, ref_neg, atol=1e-2, rtol=1e-2), \
        float(jnp.max(jnp.abs(neg_logits - ref_neg)))

    print("KERNEL_OK")
</pallas_src>

<mosaic_0001>
module attributes {stable_mosaic.version = 11 : i64} {
  func.func @_sasrec_fused_kernel(%arg0: i32, %arg1: i32, %arg2: memref<2x16x64xf32, #tpu.memory_space<vmem>>, %arg3: memref<2x1x64xf32, #tpu.memory_space<vmem>>, %arg4: memref<2x1x64xf32, #tpu.memory_space<vmem>>, %arg5: memref<2x64x64xbf16, #tpu.memory_space<vmem>>, %arg6: memref<2x1x64xf32, #tpu.memory_space<vmem>>, %arg7: memref<2x64x128xbf16, #tpu.memory_space<vmem>>, %arg8: memref<2x1x128xf32, #tpu.memory_space<vmem>>, %arg9: memref<2x64x64xbf16, #tpu.memory_space<vmem>>, %arg10: memref<2x1x64xf32, #tpu.memory_space<vmem>>, %arg11: memref<2x1x64xf32, #tpu.memory_space<vmem>>, %arg12: memref<2x1x64xf32, #tpu.memory_space<vmem>>, %arg13: memref<2x64x64xbf16, #tpu.memory_space<vmem>>, %arg14: memref<2x1x64xf32, #tpu.memory_space<vmem>>, %arg15: memref<2x64x64xbf16, #tpu.memory_space<vmem>>, %arg16: memref<2x1x64xf32, #tpu.memory_space<vmem>>, %arg17: memref<1x64xf32, #tpu.memory_space<vmem>>, %arg18: memref<1x64xf32, #tpu.memory_space<vmem>>, %arg19: memref<2x16x64xf32, #tpu.memory_space<vmem>>, %arg20: memref<2x16x3x64xf32, #tpu.memory_space<vmem>>, %arg21: memref<2x16x1xf32, #tpu.memory_space<vmem>>, %arg22: memref<2x16x3xf32, #tpu.memory_space<vmem>>, %arg23: memref<32x64xf32, #tpu.memory_space<vmem>>, %arg24: memref<32x64xbf16, #tpu.memory_space<vmem>>) attributes {dimension_semantics = [#tpu.dimension_semantics<parallel>, #tpu.dimension_semantics<arbitrary>], iteration_bounds = array<i64: 2, 2>, scalar_prefetch = 0 : i64, scratch_operands = 2 : i64, tpu.core_type = #tpu.core_type<tc>, window_params = [{transform_indices = @transform_0, window_bounds = array<i64: 2, 16, 64>}, {pipeline_mode = #tpu.pipeline_mode<synchronous>, transform_indices = @transform_1, window_bounds = array<i64: 2, 1, 64>}, {pipeline_mode = #tpu.pipeline_mode<synchronous>, transform_indices = @transform_2, window_bounds = array<i64: 2, 1, 64>}, {pipeline_mode = #tpu.pipeline_mode<synchronous>, transform_indices = @transform_3, window_bounds = array<i64: 2, 64, 64>}, {pipeline_mode = #tpu.pipeline_mode<synchronous>, transform_indices = @transform_4, window_bounds = array<i64: 2, 1, 64>}, {pipeline_mode = #tpu.pipeline_mode<synchronous>, transform_indices = @transform_5, window_bounds = array<i64: 2, 64, 128>}, {pipeline_mode = #tpu.pipeline_mode<synchronous>, transform_indices = @transform_6, window_bounds = array<i64: 2, 1, 128>}, {pipeline_mode = #tpu.pipeline_mode<synchronous>, transform_indices = @transform_7, window_bounds = array<i64: 2, 64, 64>}, {pipeline_mode = #tpu.pipeline_mode<synchronous>, transform_indices = @transform_8, window_bounds = array<i64: 2, 1, 64>}, {pipeline_mode = #tpu.pipeline_mode<synchronous>, transform_indices = @transform_9, window_bounds = array<i64: 2, 1, 64>}, {pipeline_mode = #tpu.pipeline_mode<synchronous>, transform_indices = @transform_10, window_bounds = array<i64: 2, 1, 64>}, {pipeline_mode = #tpu.pipeline_mode<synchronous>, transform_indices = @transform_11, window_bounds = array<i64: 2, 64, 64>}, {pipeline_mode = #tpu.pipeline_mode<synchronous>, transform_indices = @transform_12, window_bounds = array<i64: 2, 1, 64>}, {pipeline_mode = #tpu.pipeline_mode<synchronous>, transform_indices = @transform_13, window_bounds = array<i64: 2, 64, 64>}, {pipeline_mode = #tpu.pipeline_mode<synchronous>, transform_indices = @transform_14, window_bounds = array<i64: 2, 1, 64>}, {pipeline_mode = #tpu.pipeline_mode<synchronous>, transform_indices = @transform_15, window_bounds = array<i64: 1, 64>}, {pipeline_mode = #tpu.pipeline_mode<synchronous>, transform_indices = @transform_16, window_bounds = array<i64: 1, 64>}, {transform_indices = @transform_17, window_bounds = array<i64: 2, 16, 64>}, {transform_indices = @transform_18, window_bounds = array<i64: 2, 16, 3, 64>}, {transform_indices = @transform_19, window_bounds = array<i64: 2, 16, 1>}, {transform_indices = @transform_20, window_bounds = array<i64: 2, 16, 3>}]} {
    %c0_i32 = arith.constant 0 : i32
    %0 = arith.cmpi eq, %arg1, %c0_i32 : i32
    %1 = arith.extui %0 : i1 to i32
    %c0_i32_0 = arith.constant 0 : i32
    %2 = arith.cmpi ne, %1, %c0_i32_0 : i32
    scf.if %2 {
      %c0_65 = arith.constant 0 : index
      %c0_66 = arith.constant 0 : index
      %c0_67 = arith.constant 0 : index
      %180 = vector.load %arg2[%c0_65, %c0_66, %c0_67] : memref<2x16x64xf32, #tpu.memory_space<vmem>>, vector<2x16x64xf32>
      %181 = vector.shape_cast %180 : vector<2x16x64xf32> to vector<32x64xf32>
      %c0_68 = arith.constant 0 : index
      %c0_69 = arith.constant 0 : index
      %182 = vector.load %arg23[%c0_68, %c0_69] : memref<32x64xf32, #tpu.memory_space<vmem>>, vector<32x64xf32>
      tpu.vector_store %arg23[%c0_68, %c0_69], %181 {strides = array<i32>} : memref<32x64xf32, #tpu.memory_space<vmem>>, vector<32x64xf32>,
    } else {
    }
    %c0 = arith.constant 0 : index
    %c0_1 = arith.constant 0 : index
    %3 = vector.load %arg23[%c0, %c0_1] : memref<32x64xf32, #tpu.memory_space<vmem>>, vector<32x64xf32>
    %4 = arith.index_cast %arg1 : i32 to index
    %c0_2 = arith.constant 0 : index
    %c0_3 = arith.constant 0 : index
    %5 = vector.load %arg3[%4, %c0_2, %c0_3] : memref<2x1x64xf32, #tpu.memory_space<vmem>>, vector<1x1x64xf32>
    %6 = vector.shape_cast %5 : vector<1x1x64xf32> to vector<1x64xf32>
    %7 = arith.index_cast %arg1 : i32 to index
    %c0_4 = arith.constant 0 : index
    %c0_5 = arith.constant 0 : index
    %8 = vector.load %arg4[%7, %c0_4, %c0_5] : memref<2x1x64xf32, #tpu.memory_space<vmem>>, vector<1x1x64xf32>
    %9 = vector.shape_cast %8 : vector<1x1x64xf32> to vector<1x64xf32>
    %cst = arith.constant dense<0.000000e+00> : vector<32xf32>
    %10 = vector.multi_reduction <add>, %3, %cst [1] : vector<32x64xf32> to vector<32xf32>
    %11 = vector.shape_cast %10 : vector<32xf32> to vector<32x1xf32>
    %cst_6 = arith.constant 6.400000e+01 : f32
    %12 = vector.broadcast %cst_6 : f32 to vector<32x1xf32>
    %13 = arith.divf %11, %12 : vector<32x1xf32>
    %14 = vector.broadcast %13 : vector<32x1xf32> to vector<32x64xf32>
    %15 = arith.subf %3, %14 : vector<32x64xf32>
    %16 = arith.mulf %15, %15 : vector<32x64xf32>
    %cst_7 = arith.constant dense<0.000000e+00> : vector<32xf32>
    %17 = vector.multi_reduction <add>, %16, %cst_7 [1] : vector<32x64xf32> to vector<32xf32>
    %18 = vector.shape_cast %17 : vector<32xf32> to vector<32x1xf32>
    %cst_8 = arith.constant 6.400000e+01 : f32
    %19 = vector.broadcast %cst_8 : f32 to vector<32x1xf32>
    %20 = arith.divf %18, %19 : vector<32x1xf32>
    %21 = vector.broadcast %13 : vector<32x1xf32> to vector<32x64xf32>
    %22 = arith.subf %3, %21 : vector<32x64xf32>
    %cst_9 = arith.constant 9.99999993E-9 : f32
    %23 = vector.broadcast %cst_9 : f32 to vector<32x1xf32>
    %24 = arith.addf %20, %23 : vector<32x1xf32>
    %25 = math.rsqrt %24 : vector<32x1xf32>
    %26 = vector.broadcast %25 : vector<32x1xf32> to vector<32x64xf32>
    %27 = arith.mulf %22, %26 : vector<32x64xf32>
    %28 = vector.broadcast %6 : vector<1x64xf32> to vector<32x64xf32>
    %29 = arith.mulf %27, %28 : vector<32x64xf32>
    %30 = vector.broadcast %9 : vector<1x64xf32> to vector<32x64xf32>
    %31 = arith.addf %29, %30 : vector<32x64xf32>
    %32 = arith.truncf %31 : vector<32x64xf32> to vector<32x64xbf16>
    %33 = arith.index_cast %arg1 : i32 to index
    %c0_10 = arith.constant 0 : index
    %c0_11 = arith.constant 0 : index
    %34 = vector.load %arg5[%33, %c0_10, %c0_11] : memref<2x64x64xbf16, #tpu.memory_space<vmem>>, vector<1x64x64xbf16>
    %35 = vector.shape_cast %34 : vector<1x64x64xbf16> to vector<64x64xbf16>
    %cst_12 = arith.constant dense<0.000000e+00> : vector<32x64xf32>
    %36 = tpu.matmul %32, %35, %cst_12 {dimension_numbers = #tpu.dot_dimension_numbers<[1], [0], [0], [1], [0, 0, 1, 1], [], []>} : vector<32x64xbf16>, vector<64x64xbf16>, vector<32x64xf32> -> vector<32x64xf32>
    %37 = arith.index_cast %arg1 : i32 to index
    %c0_13 = arith.constant 0 : index
    %c0_14 = arith.constant 0 : index
    %38 = vector.load %arg6[%37, %c0_13, %c0_14] : memref<2x1x64xf32, #tpu.memory_space<vmem>>, vector<1x1x64xf32>
    %39 = vector.shape_cast %38 : vector<1x1x64xf32> to vector<1x64xf32>
    %40 = vector.broadcast %39 : vector<1x64xf32> to vector<32x64xf32>
    %41 = arith.addf %36, %40 : vector<32x64xf32>
    %42 = arith.truncf %3 : vector<32x64xf32> to vector<32x64xbf16>
    %43 = arith.index_cast %arg1 : i32 to index
    %c0_15 = arith.constant 0 : index
    %c0_16 = arith.constant 0 : index
    %44 = vector.load %arg7[%43, %c0_15, %c0_16] : memref<2x64x128xbf16, #tpu.memory_space<vmem>>, vector<1x64x128xbf16>
    %45 = vector.shape_cast %44 : vector<1x64x128xbf16> to vector<64x128xbf16>
    %cst_17 = arith.constant dense<0.000000e+00> : vector<32x128xf32>
    %46 = tpu.matmul %42, %45, %cst_17 {dimension_numbers = #tpu.dot_dimension_numbers<[1], [0], [0], [1], [0, 0, 1, 1], [], []>} : vector<32x64xbf16>, vector<64x128xbf16>, vector<32x128xf32> -> vector<32x128xf32>
    %47 = arith.index_cast %arg1 : i32 to index
    %c0_18 = arith.constant 0 : index
    %c0_19 = arith.constant 0 : index
    %48 = vector.load %arg8[%47, %c0_18, %c0_19] : memref<2x1x128xf32, #tpu.memory_space<vmem>>, vector<1x1x128xf32>
    %49 = vector.shape_cast %48 : vector<1x1x128xf32> to vector<1x128xf32>
    %50 = vector.broadcast %49 : vector<1x128xf32> to vector<32x128xf32>
    %51 = arith.addf %46, %50 : vector<32x128xf32>
    %52 = vector.shape_cast %41 : vector<32x64xf32> to vector<2x16x64xf32>
    %53 = vector.shape_cast %51 : vector<32x128xf32> to vector<2x16x128xf32>
    %54 = tpu.iota {dimensions = array<i32: 0>} : vector<16x16xi32>
    %55 = tpu.iota {dimensions = array<i32: 1>} : vector<16x16xi32>
    %56 = arith.cmpi sgt, %55, %54 : vector<16x16xi32>
    %57 = vector.shape_cast %56 : vector<16x16xi1> to vector<1x16x16xi1>
    %58 = vector.extract_strided_slice %52 {offsets = [0, 0, 0], sizes = [2, 16, 32], strides = [1, 1, 1]} : vector<2x16x64xf32> to vector<2x16x32xf32>
    %59 = arith.truncf %58 : vector<2x16x32xf32> to vector<2x16x32xbf16>
    %60 = vector.extract_strided_slice %53 {offsets = [0, 0, 0], sizes = [2, 16, 32], strides = [1, 1, 1]} : vector<2x16x128xf32> to vector<2x16x32xf32>
    %61 = arith.truncf %60 : vector<2x16x32xf32> to vector<2x16x32xbf16>
    %62 = vector.extract_strided_slice %53 {offsets = [0, 0, 64], sizes = [2, 16, 32], strides = [1, 1, 1]} : vector<2x16x128xf32> to vector<2x16x32xf32>
    %63 = arith.truncf %62 : vector<2x16x32xf32> to vector<2x16x32xbf16>
    "tpu.trace_start"() <{level = 10 : i32, message = "bqd,bkd->bqk"}> : () -> ()
    %cst_20 = arith.constant dense<0.000000e+00> : vector<2x16x16xf32>
    %64 = tpu.matmul %59, %61, %cst_20 {dimension_numbers = #tpu.dot_dimension_numbers<[2], [2], [1], [1], [0, 0, 0, 1, 1, 1], [0], [0]>} : vector<2x16x32xbf16>, vector<2x16x32xbf16>, vector<2x16x16xf32> -> vector<2x16x16xf32>
    "tpu.trace_stop"() : () -> ()
    %cst_21 = arith.constant 0.176776692 : f32
    %65 = vector.broadcast %cst_21 : f32 to vector<2x16x16xf32>
    %66 = arith.mulf %64, %65 : vector<2x16x16xf32>
    %cst_22 = arith.constant -1.000000e+30 : f32
    %67 = vector.shape_cast %57 : vector<1x16x16xi1> to vector<1x16x16xi1>
    %68 = vector.broadcast %67 : vector<1x16x16xi1> to vector<2x16x16xi1>
    %69 = vector.broadcast %cst_22 : f32 to vector<2x16x16xf32>
    %70 = arith.select %68, %69, %66 : vector<2x16x16xi1>, vector<2x16x16xf32>
    %cst_23 = arith.constant dense<0xFF800000> : vector<2x16xf32>
    %71 = vector.multi_reduction <maximumf>, %70, %cst_23 [2] : vector<2x16x16xf32> to vector<2x16xf32>
    %72 = vector.shape_cast %71 : vector<2x16xf32> to vector<2x16x1xf32>
    %73 = vector.broadcast %72 : vector<2x16x1xf32> to vector<2x16x16xf32>
    %74 = arith.subf %70, %73 : vector<2x16x16xf32>
    %75 = math.exp %74 : vector<2x16x16xf32>
    %cst_24 = arith.constant dense<0.000000e+00> : vector<2x16xf32>
    %76 = vector.multi_reduction <add>, %75, %cst_24 [2] : vector<2x16x16xf32> to vector<2x16xf32>
    %77 = vector.shape_cast %76 : vector<2x16xf32> to vector<2x16x1xf32>
    %78 = tpu.reciprocal %77 {approx = true} : vector<2x16x1xf32> -> vector<2x16x1xf32>
    %79 = vector.broadcast %78 : vector<2x16x1xf32> to vector<2x16x16xf32>
    %80 = arith.mulf %75, %79 : vector<2x16x16xf32>
    %81 = arith.truncf %80 : vector<2x16x16xf32> to vector<2x16x16xbf16>
    "tpu.trace_start"() <{level = 10 : i32, message = "bqk,bkd->bqd"}> : () -> ()
    %cst_25 = arith.constant dense<0.000000e+00> : vector<2x16x32xf32>
    %82 = tpu.matmul %81, %63, %cst_25 {dimension_numbers = #tpu.dot_dimension_numbers<[2], [1], [1], [2], [0, 0, 0, 1, 1, 2], [0], [0]>} : vector<2x16x16xbf16>, vector<2x16x32xbf16>, vector<2x16x32xf32> -> vector<2x16x32xf32>
    "tpu.trace_stop"() : () -> ()
    %83 = vector.shape_cast %82 : vector<2x16x32xf32> to vector<32x32xf32>
    %84 = arith.truncf %83 : vector<32x32xf32> to vector<32x32xbf16>
    %c0_26 = arith.constant 0 : index
    %c0_27 = arith.constant 0 : index
    %85 = vector.load %arg24[%c0_26, %c0_27] : memref<32x64xbf16, #tpu.memory_space<vmem>>, vector<32x32xbf16>
    tpu.vector_store %arg24[%c0_26, %c0_27], %84 {strides = array<i32>} : memref<32x64xbf16, #tpu.memory_space<vmem>>, vector<32x32xbf16>,
    %86 = vector.extract_strided_slice %52 {offsets = [0, 0, 32], sizes = [2, 16, 32], strides = [1, 1, 1]} : vector<2x16x64xf32> to vector<2x16x32xf32>
    %87 = arith.truncf %86 : vector<2x16x32xf32> to vector<2x16x32xbf16>
    %88 = vector.extract_strided_slice %53 {offsets = [0, 0, 32], sizes = [2, 16, 32], strides = [1, 1, 1]} : vector<2x16x128xf32> to vector<2x16x32xf32>
    %89 = arith.truncf %88 : vector<2x16x32xf32> to vector<2x16x32xbf16>
    %90 = vector.extract_strided_slice %53 {offsets = [0, 0, 96], sizes = [2, 16, 32], strides = [1, 1, 1]} : vector<2x16x128xf32> to vector<2x16x32xf32>
    %91 = arith.truncf %90 : vector<2x16x32xf32> to vector<2x16x32xbf16>
    "tpu.trace_start"() <{level = 10 : i32, message = "bqd,bkd->bqk"}> : () -> ()
    %cst_28 = arith.constant dense<0.000000e+00> : vector<2x16x16xf32>
    %92 = tpu.matmul %87, %89, %cst_28 {dimension_numbers = #tpu.dot_dimension_numbers<[2], [2], [1], [1], [0, 0, 0, 1, 1, 1], [0], [0]>} : vector<2x16x32xbf16>, vector<2x16x32xbf16>, vector<2x16x16xf32> -> vector<2x16x16xf32>
    "tpu.trace_stop"() : () -> ()
    %cst_29 = arith.constant 0.176776692 : f32
    %93 = vector.broadcast %cst_29 : f32 to vector<2x16x16xf32>
    %94 = arith.mulf %92, %93 : vector<2x16x16xf32>
    %cst_30 = arith.constant -1.000000e+30 : f32
    %95 = vector.shape_cast %57 : vector<1x16x16xi1> to vector<1x16x16xi1>
    %96 = vector.broadcast %95 : vector<1x16x16xi1> to vector<2x16x16xi1>
    %97 = vector.broadcast %cst_30 : f32 to vector<2x16x16xf32>
    %98 = arith.select %96, %97, %94 : vector<2x16x16xi1>, vector<2x16x16xf32>
    %cst_31 = arith.constant dense<0xFF800000> : vector<2x16xf32>
    %99 = vector.multi_reduction <maximumf>, %98, %cst_31 [2] : vector<2x16x16xf32> to vector<2x16xf32>
    %100 = vector.shape_cast %99 : vector<2x16xf32> to vector<2x16x1xf32>
    %101 = vector.broadcast %100 : vector<2x16x1xf32> to vector<2x16x16xf32>
    %102 = arith.subf %98, %101 : vector<2x16x16xf32>
    %103 = math.exp %102 : vector<2x16x16xf32>
    %cst_32 = arith.constant dense<0.000000e+00> : vector<2x16xf32>
    %104 = vector.multi_reduction <add>, %103, %cst_32 [2] : vector<2x16x16xf32> to vector<2x16xf32>
    %105 = vector.shape_cast %104 : vector<2x16xf32> to vector<2x16x1xf32>
    %106 = tpu.reciprocal %105 {approx = true} : vector<2x16x1xf32> -> vector<2x16x1xf32>
    %107 = vector.broadcast %106 : vector<2x16x1xf32> to vector<2x16x16xf32>
    %108 = arith.mulf %103, %107 : vector<2x16x16xf32>
    %109 = arith.truncf %108 : vector<2x16x16xf32> to vector<2x16x16xbf16>
    "tpu.trace_start"() <{level = 10 : i32, message = "bqk,bkd->bqd"}> : () -> ()
    %cst_33 = arith.constant dense<0.000000e+00> : vector<2x16x32xf32>
    %110 = tpu.matmul %109, %91, %cst_33 {dimension_numbers = #tpu.dot_dimension_numbers<[2], [1], [1], [2], [0, 0, 0, 1, 1, 2], [0], [0]>} : vector<2x16x16xbf16>, vector<2x16x32xbf16>, vector<2x16x32xf32> -> vector<2x16x32xf32>
    "tpu.trace_stop"() : () -> ()
    %111 = vector.shape_cast %110 : vector<2x16x32xf32> to vector<32x32xf32>
    %112 = arith.truncf %111 : vector<32x32xf32> to vector<32x32xbf16>
    %c0_34 = arith.constant 0 : index
    %c32 = arith.constant 32 : index
    %113 = vector.load %arg24[%c0_34, %c32] : memref<32x64xbf16, #tpu.memory_space<vmem>>, vector<32x32xbf16>
    tpu.vector_store %arg24[%c0_34, %c32], %112 {strides = array<i32>} : memref<32x64xbf16, #tpu.memory_space<vmem>>, vector<32x32xbf16>,
    %c0_35 = arith.constant 0 : index
    %c0_36 = arith.constant 0 : index
    %114 = vector.load %arg24[%c0_35, %c0_36] : memref<32x64xbf16, #tpu.memory_space<vmem>>, vector<32x64xbf16>
    %115 = arith.index_cast %arg1 : i32 to index
    %c0_37 = arith.constant 0 : index
    %c0_38 = arith.constant 0 : index
    %116 = vector.load %arg9[%115, %c0_37, %c0_38] : memref<2x64x64xbf16, #tpu.memory_space<vmem>>, vector<1x64x64xbf16>
    %117 = vector.shape_cast %116 : vector<1x64x64xbf16> to vector<64x64xbf16>
    %cst_39 = arith.constant dense<0.000000e+00> : vector<32x64xf32>
    %118 = tpu.matmul %114, %117, %cst_39 {dimension_numbers = #tpu.dot_dimension_numbers<[1], [0], [0], [1], [0, 0, 1, 1], [], []>} : vector<32x64xbf16>, vector<64x64xbf16>, vector<32x64xf32> -> vector<32x64xf32>
    %119 = arith.index_cast %arg1 : i32 to index
    %c0_40 = arith.constant 0 : index
    %c0_41 = arith.constant 0 : index
    %120 = vector.load %arg10[%119, %c0_40, %c0_41] : memref<2x1x64xf32, #tpu.memory_space<vmem>>, vector<1x1x64xf32>
    %121 = vector.shape_cast %120 : vector<1x1x64xf32> to vector<1x64xf32>
    %122 = vector.broadcast %121 : vector<1x64xf32> to vector<32x64xf32>
    %123 = arith.addf %118, %122 : vector<32x64xf32>
    %124 = arith.addf %31, %123 : vector<32x64xf32>
    %125 = arith.index_cast %arg1 : i32 to index
    %c0_42 = arith.constant 0 : index
    %c0_43 = arith.constant 0 : index
    %126 = vector.load %arg11[%125, %c0_42, %c0_43] : memref<2x1x64xf32, #tpu.memory_space<vmem>>, vector<1x1x64xf32>
    %127 = vector.shape_cast %126 : vector<1x1x64xf32> to vector<1x64xf32>
    %128 = arith.index_cast %arg1 : i32 to index
    %c0_44 = arith.constant 0 : index
    %c0_45 = arith.constant 0 : index
    %129 = vector.load %arg12[%128, %c0_44, %c0_45] : memref<2x1x64xf32, #tpu.memory_space<vmem>>, vector<1x1x64xf32>
    %130 = vector.shape_cast %129 : vector<1x1x64xf32> to vector<1x64xf32>
    %cst_46 = arith.constant dense<0.000000e+00> : vector<32xf32>
    %131 = vector.multi_reduction <add>, %124, %cst_46 [1] : vector<32x64xf32> to vector<32xf32>
    %132 = vector.shape_cast %131 : vector<32xf32> to vector<32x1xf32>
    %cst_47 = arith.constant 6.400000e+01 : f32
    %133 = vector.broadcast %cst_47 : f32 to vector<32x1xf32>
    %134 = arith.divf %132, %133 : vector<32x1xf32>
    %135 = vector.broadcast %134 : vector<32x1xf32> to vector<32x64xf32>
    %136 = arith.subf %124, %135 : vector<32x64xf32>
    %137 = arith.mulf %136, %136 : vector<32x64xf32>
    %cst_48 = arith.constant dense<0.000000e+00> : vector<32xf32>
    %138 = vector.multi_reduction <add>, %137, %cst_48 [1] : vector<32x64xf32> to vector<32xf32>
    %139 = vector.shape_cast %138 : vector<32xf32> to vector<32x1xf32>
    %cst_49 = arith.constant 6.400000e+01 : f32
    %140 = vector.broadcast %cst_49 : f32 to vector<32x1xf32>
    %141 = arith.divf %139, %140 : vector<32x1xf32>
    %142 = vector.broadcast %134 : vector<32x1xf32> to vector<32x64xf32>
    %143 = arith.subf %124, %142 : vector<32x64xf32>
    %cst_50 = arith.constant 9.99999993E-9 : f32
    %144 = vector.broadcast %cst_50 : f32 to vector<32x1xf32>
    %145 = arith.addf %141, %144 : vector<32x1xf32>
    %146 = math.rsqrt %145 : vector<32x1xf32>
    %147 = vector.broadcast %146 : vector<32x1xf32> to vector<32x64xf32>
    %148 = arith.mulf %143, %147 : vector<32x64xf32>
    %149 = vector.broadcast %127 : vector<1x64xf32> to vector<32x64xf32>
    %150 = arith.mulf %148, %149 : vector<32x64xf32>
    %151 = vector.broadcast %130 : vector<1x64xf32> to vector<32x64xf32>
    %152 = arith.addf %150, %151 : vector<32x64xf32>
    %153 = arith.truncf %152 : vector<32x64xf32> to vector<32x64xbf16>
    %154 = arith.index_cast %arg1 : i32 to index
    %c0_51 = arith.constant 0 : index
    %c0_52 = arith.constant 0 : index
    %155 = vector.load %arg13[%154, %c0_51, %c0_52] : memref<2x64x64xbf16, #tpu.memory_space<vmem>>, vector<1x64x64xbf16>
    %156 = vector.shape_cast %155 : vector<1x64x64xbf16> to vector<64x64xbf16>
    %cst_53 = arith.constant dense<0.000000e+00> : vector<32x64xf32>
    %157 = tpu.matmul %153, %156, %cst_53 {dimension_numbers = #tpu.dot_dimension_numbers<[1], [0], [0], [1], [0, 0, 1, 1], [], []>} : vector<32x64xbf16>, vector<64x64xbf16>, vector<32x64xf32> -> vector<32x64xf32>
    %158 = arith.index_cast %arg1 : i32 to index
    %c0_54 = arith.constant 0 : index
    %c0_55 = arith.constant 0 : index
    %159 = vector.load %arg14[%158, %c0_54, %c0_55] : memref<2x1x64xf32, #tpu.memory_space<vmem>>, vector<1x1x64xf32>
    %160 = vector.shape_cast %159 : vector<1x1x64xf32> to vector<1x64xf32>
    %161 = vector.broadcast %160 : vector<1x64xf32> to vector<32x64xf32>
    %162 = arith.addf %157, %161 : vector<32x64xf32>
    %cst_56 = arith.constant 0.000000e+00 : f32
    %163 = vector.broadcast %cst_56 : f32 to vector<32x64xf32>
    %164 = arith.maximumf %162, %163 : vector<32x64xf32>
    %165 = arith.truncf %164 : vector<32x64xf32> to vector<32x64xbf16>
    %166 = arith.index_cast %arg1 : i32 to index
    %c0_57 = arith.constant 0 : index
    %c0_58 = arith.constant 0 : index
    %167 = vector.load %arg15[%166, %c0_57, %c0_58] : memref<2x64x64xbf16, #tpu.memory_space<vmem>>, vector<1x64x64xbf16>
    %168 = vector.shape_cast %167 : vector<1x64x64xbf16> to vector<64x64xbf16>
    %cst_59 = arith.constant dense<0.000000e+00> : vector<32x64xf32>
    %169 = tpu.matmul %165, %168, %cst_59 {dimension_numbers = #tpu.dot_dimension_numbers<[1], [0], [0], [1], [0, 0, 1, 1], [], []>} : vector<32x64xbf16>, vector<64x64xbf16>, vector<32x64xf32> -> vector<32x64xf32>
    %170 = arith.index_cast %arg1 : i32 to index
    %c0_60 = arith.constant 0 : index
    %c0_61 = arith.constant 0 : index
    %171 = vector.load %arg16[%170, %c0_60, %c0_61] : memref<2x1x64xf32, #tpu.memory_space<vmem>>, vector<1x1x64xf32>
    %172 = vector.shape_cast %171 : vector<1x1x64xf32> to vector<1x64xf32>
    %173 = vector.broadcast %172 : vector<1x64xf32> to vector<32x64xf32>
    %174 = arith.addf %169, %173 : vector<32x64xf32>
    %175 = arith.addf %174, %152 : vector<32x64xf32>
    %c0_62 = arith.constant 0 : index
    %c0_63 = arith.constant 0 : index
    %176 = vector.load %arg23[%c0_62, %c0_63] : memref<32x64xf32, #tpu.memory_space<vmem>>, vector<32x64xf32>
    tpu.vector_store %arg23[%c0_62, %c0_63], %175 {strides = array<i32>} : memref<32x64xf32, #tpu.memory_space<vmem>>, vector<32x64xf32>,
    %c1_i32 = arith.constant 1 : i32
    %177 = arith.cmpi eq, %arg1, %c1_i32 : i32
    %178 = arith.extui %177 : i1 to i32
    %c0_i32_64 = arith.constant 0 : i32
    %179 = arith.cmpi ne, %178, %c0_i32_64 : i32
    scf.if %179 {
      %c0_65 = arith.constant 0 : index
      %c0_66 = arith.constant 0 : index
      %180 = vector.load %arg17[%c0_65, %c0_66] : memref<1x64xf32, #tpu.memory_space<vmem>>, vector<1x64xf32>
      %c0_67 = arith.constant 0 : index
      %c0_68 = arith.constant 0 : index
      %181 = vector.load %arg18[%c0_67, %c0_68] : memref<1x64xf32, #tpu.memory_space<vmem>>, vector<1x64xf32>
      %cst_69 = arith.constant dense<0.000000e+00> : vector<32xf32>
      %182 = vector.multi_reduction <add>, %175, %cst_69 [1] : vector<32x64xf32> to vector<32xf32>
      %183 = vector.shape_cast %182 : vector<32xf32> to vector<32x1xf32>
      %cst_70 = arith.constant 6.400000e+01 : f32
      %184 = vector.broadcast %cst_70 : f32 to vector<32x1xf32>
      %185 = arith.divf %183, %184 : vector<32x1xf32>
      %186 = vector.broadcast %185 : vector<32x1xf32> to vector<32x64xf32>
      %187 = arith.subf %175, %186 : vector<32x64xf32>
      %188 = arith.mulf %187, %187 : vector<32x64xf32>
      %cst_71 = arith.constant dense<0.000000e+00> : vector<32xf32>
      %189 = vector.multi_reduction <add>, %188, %cst_71 [1] : vector<32x64xf32> to vector<32xf32>
      %190 = vector.shape_cast %189 : vector<32xf32> to vector<32x1xf32>
      %cst_72 = arith.constant 6.400000e+01 : f32
      %191 = vector.broadcast %cst_72 : f32 to vector<32x1xf32>
      %192 = arith.divf %190, %191 : vector<32x1xf32>
      %193 = vector.broadcast %185 : vector<32x1xf32> to vector<32x64xf32>
      %194 = arith.subf %175, %193 : vector<32x64xf32>
      %cst_73 = arith.constant 9.99999993E-9 : f32
      %195 = vector.broadcast %cst_73 : f32 to vector<32x1xf32>
      %196 = arith.addf %192, %195 : vector<32x1xf32>
      %197 = math.rsqrt %196 : vector<32x1xf32>
      %198 = vector.broadcast %197 : vector<32x1xf32> to vector<32x64xf32>
      %199 = arith.mulf %194, %198 : vector<32x64xf32>
      %200 = vector.broadcast %180 : vector<1x64xf32> to vector<32x64xf32>
      %201 = arith.mulf %199, %200 : vector<32x64xf32>
      %202 = vector.broadcast %181 : vector<1x64xf32> to vector<32x64xf32>
      %203 = arith.addf %201, %202 : vector<32x64xf32>
      %c0_74 = arith.constant 0 : index
      %c0_75 = arith.constant 0 : index
      %c0_76 = arith.constant 0 : index
      %204 = vector.load %arg19[%c0_74, %c0_75, %c0_76] : memref<2x16x64xf32, #tpu.memory_space<vmem>>, vector<2x16x64xf32>
      %205 = vector.shape_cast %204 : vector<2x16x64xf32> to vector<32x64xf32>
      %206 = arith.mulf %203, %205 : vector<32x64xf32>
      %cst_77 = arith.constant dense<0.000000e+00> : vector<32xf32>
      %207 = vector.multi_reduction <add>, %206, %cst_77 [1] : vector<32x64xf32> to vector<32xf32>
      %208 = vector.shape_cast %207 : vector<32xf32> to vector<32x1xf32>
      %209 = vector.shape_cast %208 : vector<32x1xf32> to vector<2x16x1xf32>
      %c0_78 = arith.constant 0 : index
      %c0_79 = arith.constant 0 : index
      %c0_80 = arith.constant 0 : index
      %210 = vector.load %arg21[%c0_78, %c0_79, %c0_80] : memref<2x16x1xf32, #tpu.memory_space<vmem>>, vector<2x16x1xf32>
      tpu.vector_store %arg21[%c0_78, %c0_79, %c0_80], %209 {strides = array<i32>} : memref<2x16x1xf32, #tpu.memory_space<vmem>>, vector<2x16x1xf32>,
      %c0_81 = arith.constant 0 : index
      %c0_82 = arith.constant 0 : index
      %c0_83 = arith.constant 0 : index
      %c0_84 = arith.constant 0 : index
      %211 = vector.load %arg20[%c0_81, %c0_82, %c0_83, %c0_84] : memref<2x16x3x64xf32, #tpu.memory_space<vmem>>, vector<2x16x3x64xf32>
      %212 = vector.shape_cast %211 : vector<2x16x3x64xf32> to vector<32x3x64xf32>
      %213 = vector.shape_cast %203 : vector<32x64xf32> to vector<32x1x64xf32>
      %214 = vector.broadcast %213 : vector<32x1x64xf32> to vector<32x3x64xf32>
      %215 = arith.mulf %214, %212 : vector<32x3x64xf32>
      %cst_85 = arith.constant dense<0.000000e+00> : vector<32x3xf32>
      %216 = vector.multi_reduction <add>, %215, %cst_85 [2] : vector<32x3x64xf32> to vector<32x3xf32>
      %217 = vector.shape_cast %216 : vector<32x3xf32> to vector<2x16x3xf32>
      %c0_86 = arith.constant 0 : index
      %c0_87 = arith.constant 0 : index
      %c0_88 = arith.constant 0 : index
      %218 = vector.load %arg22[%c0_86, %c0_87, %c0_88] : memref<2x16x3xf32, #tpu.memory_space<vmem>>, vector<2x16x3xf32>
      tpu.vector_store %arg22[%c0_86, %c0_87, %c0_88], %217 {strides = array<i32>} : memref<2x16x3xf32, #tpu.memory_space<vmem>>, vector<2x16x3xf32>,
    } else {
    }
    return
  }
  func.func @transform_0(%arg0: i32, %arg1: i32) -> (i32, i32, i32) {
    %c0_i32 = arith.constant 0 : i32
    %c0_i32_0 = arith.constant 0 : i32
    %c0_i32_1 = arith.constant 0 : i32
    return %arg0, %c0_i32, %c0_i32_0 : i32, i32, i32
  }
  func.func @transform_1(%arg0: i32, %arg1: i32) -> (i32, i32, i32) {
    %c0_i32 = arith.constant 0 : i32
    %c0_i32_0 = arith.constant 0 : i32
    %c0_i32_1 = arith.constant 0 : i32
    %c0_i32_2 = arith.constant 0 : i32
    return %c0_i32, %c0_i32_0, %c0_i32_1 : i32, i32, i32
  }
  func.func @transform_2(%arg0: i32, %arg1: i32) -> (i32, i32, i32) {
    %c0_i32 = arith.constant 0 : i32
    %c0_i32_0 = arith.constant 0 : i32
    %c0_i32_1 = arith.constant 0 : i32
    %c0_i32_2 = arith.constant 0 : i32
    return %c0_i32, %c0_i32_0, %c0_i32_1 : i32, i32, i32
  }
  func.func @transform_3(%arg0: i32, %arg1: i32) -> (i32, i32, i32) {
    %c0_i32 = arith.constant 0 : i32
    %c0_i32_0 = arith.constant 0 : i32
    %c0_i32_1 = arith.constant 0 : i32
    %c0_i32_2 = arith.constant 0 : i32
    return %c0_i32, %c0_i32_0, %c0_i32_1 : i32, i32, i32
  }
  func.func @transform_4(%arg0: i32, %arg1: i32) -> (i32, i32, i32) {
    %c0_i32 = arith.constant 0 : i32
    %c0_i32_0 = arith.constant 0 : i32
    %c0_i32_1 = arith.constant 0 : i32
    %c0_i32_2 = arith.constant 0 : i32
    return %c0_i32, %c0_i32_0, %c0_i32_1 : i32, i32, i32
  }
  func.func @transform_5(%arg0: i32, %arg1: i32) -> (i32, i32, i32) {
    %c0_i32 = arith.constant 0 : i32
    %c0_i32_0 = arith.constant 0 : i32
    %c0_i32_1 = arith.constant 0 : i32
    %c0_i32_2 = arith.constant 0 : i32
    return %c0_i32, %c0_i32_0, %c0_i32_1 : i32, i32, i32
  }
  func.func @transform_6(%arg0: i32, %arg1: i32) -> (i32, i32, i32) {
    %c0_i32 = arith.constant 0 : i32
    %c0_i32_0 = arith.constant 0 : i32
    %c0_i32_1 = arith.constant 0 : i32
    %c0_i32_2 = arith.constant 0 : i32
    return %c0_i32, %c0_i32_0, %c0_i32_1 : i32, i32, i32
  }
  func.func @transform_7(%arg0: i32, %arg1: i32) -> (i32, i32, i32) {
    %c0_i32 = arith.constant 0 : i32
    %c0_i32_0 = arith.constant 0 : i32
    %c0_i32_1 = arith.constant 0 : i32
    %c0_i32_2 = arith.constant 0 : i32
    return %c0_i32, %c0_i32_0, %c0_i32_1 : i32, i32, i32
  }
  func.func @transform_8(%arg0: i32, %arg1: i32) -> (i32, i32, i32) {
    %c0_i32 = arith.constant 0 : i32
    %c0_i32_0 = arith.constant 0 : i32
    %c0_i32_1 = arith.constant 0 : i32
    %c0_i32_2 = arith.constant 0 : i32
    return %c0_i32, %c0_i32_0, %c0_i32_1 : i32, i32, i32
  }
  func.func @transform_9(%arg0: i32, %arg1: i32) -> (i32, i32, i32) {
    %c0_i32 = arith.constant 0 : i32
    %c0_i32_0 = arith.constant 0 : i32
    %c0_i32_1 = arith.constant 0 : i32
    %c0_i32_2 = arith.constant 0 : i32
    return %c0_i32, %c0_i32_0, %c0_i32_1 : i32, i32, i32
  }
  func.func @transform_10(%arg0: i32, %arg1: i32) -> (i32, i32, i32) {
    %c0_i32 = arith.constant 0 : i32
    %c0_i32_0 = arith.constant 0 : i32
    %c0_i32_1 = arith.constant 0 : i32
    %c0_i32_2 = arith.constant 0 : i32
    return %c0_i32, %c0_i32_0, %c0_i32_1 : i32, i32, i32
  }
  func.func @transform_11(%arg0: i32, %arg1: i32) -> (i32, i32, i32) {
    %c0_i32 = arith.constant 0 : i32
    %c0_i32_0 = arith.constant 0 : i32
    %c0_i32_1 = arith.constant 0 : i32
    %c0_i32_2 = arith.constant 0 : i32
    return %c0_i32, %c0_i32_0, %c0_i32_1 : i32, i32, i32
  }
  func.func @transform_12(%arg0: i32, %arg1: i32) -> (i32, i32, i32) {
    %c0_i32 = arith.constant 0 : i32
    %c0_i32_0 = arith.constant 0 : i32
    %c0_i32_1 = arith.constant 0 : i32
    %c0_i32_2 = arith.constant 0 : i32
    return %c0_i32, %c0_i32_0, %c0_i32_1 : i32, i32, i32
  }
  func.func @transform_13(%arg0: i32, %arg1: i32) -> (i32, i32, i32) {
    %c0_i32 = arith.constant 0 : i32
    %c0_i32_0 = arith.constant 0 : i32
    %c0_i32_1 = arith.constant 0 : i32
    %c0_i32_2 = arith.constant 0 : i32
    return %c0_i32, %c0_i32_0, %c0_i32_1 : i32, i32, i32
  }
  func.func @transform_14(%arg0: i32, %arg1: i32) -> (i32, i32, i32) {
    %c0_i32 = arith.constant 0 : i32
    %c0_i32_0 = arith.constant 0 : i32
    %c0_i32_1 = arith.constant 0 : i32
    %c0_i32_2 = arith.constant 0 : i32
    return %c0_i32, %c0_i32_0, %c0_i32_1 : i32, i32, i32
  }
  func.func @transform_15(%arg0: i32, %arg1: i32) -> (i32, i32) {
    %c0_i32 = arith.constant 0 : i32
    %c0_i32_0 = arith.constant 0 : i32
    %c0_i32_1 = arith.constant 0 : i32
    return %c0_i32, %c0_i32_0 : i32, i32
  }
  func.func @transform_16(%arg0: i32, %arg1: i32) -> (i32, i32) {
    %c0_i32 = arith.constant 0 : i32
    %c0_i32_0 = arith.constant 0 : i32
    %c0_i32_1 = arith.constant 0 : i32
    return %c0_i32, %c0_i32_0 : i32, i32
  }
  func.func @transform_17(%arg0: i32, %arg1: i32) -> (i32, i32, i32) {
    %c0_i32 = arith.constant 0 : i32
    %c0_i32_0 = arith.constant 0 : i32
    %c0_i32_1 = arith.constant 0 : i32
    return %arg0, %c0_i32, %c0_i32_0 : i32, i32, i32
  }
  func.func @transform_18(%arg0: i32, %arg1: i32) -> (i32, i32, i32, i32) {
    %c0_i32 = arith.constant 0 : i32
    %c0_i32_0 = arith.constant 0 : i32
    %c0_i32_1 = arith.constant 0 : i32
    %c0_i32_2 = arith.constant 0 : i32
    return %arg0, %c0_i32, %c0_i32_0, %c0_i32_1 : i32, i32, i32, i32
  }
  func.func @transform_19(%arg0: i32, %arg1: i32) -> (i32, i32, i32) {
    %c0_i32 = arith.constant 0 : i32
    %c0_i32_0 = arith.constant 0 : i32
    %c0_i32_1 = arith.constant 0 : i32
    return %arg0, %c0_i32, %c0_i32_0 : i32, i32, i32
  }
  func.func @transform_20(%arg0: i32, %arg1: i32) -> (i32, i32, i32) {
    %c0_i32 = arith.constant 0 : i32
    %c0_i32_0 = arith.constant 0 : i32
    %c0_i32_1 = arith.constant 0 : i32
    return %arg0, %c0_i32, %c0_i32_0 : i32, i32, i32
  }
}

</mosaic_0001>

<bundles_post_ra>
// kernel: tpu_custom_call.1
= control target key start
LH: loop header
LB: loop body
LE: loop exit
PB: predicated region body
PF: predicated region fallthrough
CT: control target
= control target key end

     0   :  { %s4185_s0 = inlined_call_operand.vmem [shape: f32[4,16,64], index: 0, kind: input, shape index: {}]   ;;  %s4186_s1 = inlined_call_operand.hbm [shape: f32[2,1,64], index: 1, kind: input, shape index: {}]   ;;  %s4187_s2 = inlined_call_operand.vmem [shape: f32[2,1,64], index: 2, kind: input, shape index: {}]   ;;  %s4188_s3 = inlined_call_operand.vmem [shape: bf16[2,64,64], index: 3, kind: input, shape index: {}]   ;;  %s4189_s4 = inlined_call_operand.vmem [shape: f32[2,1,64], index: 4, kind: input, shape index: {}]   ;;  %s4190_s5 = inlined_call_operand.vmem [shape: bf16[2,64,128], index: 5, kind: input, shape index: {}]   ;;  %s4191_s6 = inlined_call_operand.vmem [shape: f32[2,1,128], index: 6, kind: input, shape index: {}]   ;;  %s4192_s7 = inlined_call_operand.vmem [shape: bf16[2,64,64], index: 7, kind: input, shape index: {}]   ;;  %s4193_s8 = inlined_call_operand.vmem [shape: f32[2,1,64], index: 8, kind: input, shape index: {}]   ;;  %s4194_s9 = inlined_call_operand.vmem [shape: f32[2,1,64], index: 9, kind: input, shape index: {}]   ;;  %s4195_s10 = inlined_call_operand.vmem [shape: f32[2,1,64], index: 10, kind: input, shape index: {}]   ;;  %s4196_s11 = inlined_call_operand.vmem [shape: bf16[2,64,64], index: 11, kind: input, shape index: {}]   ;;  %s4197_s12 = inlined_call_operand.vmem [shape: f32[2,1,64], index: 12, kind: input, shape index: {}]   ;;  %s4198_s13 = inlined_call_operand.vmem [shape: bf16[2,64,64], index: 13, kind: input, shape index: {}]   ;;  %s4199_s14 = inlined_call_operand.vmem [shape: f32[2,1,64], index: 14, kind: input, shape index: {}]   ;;  %s4200_s15 = inlined_call_operand.vmem [shape: f32[1,64], index: 15, kind: input, shape index: {}]   ;;  %s4201_s16 = inlined_call_operand.vmem [shape: f32[1,64], index: 16, kind: input, shape index: {}]   ;;  %s4202_s17 = inlined_call_operand.vmem [shape: f32[4,16,64], index: 17, kind: input, shape index: {}]   ;;  %s4203_s18 = inlined_call_operand.vmem [shape: f32[4,16,3,64], index: 18, kind: input, shape index: {}]   ;;  %s4204_s19 = inlined_call_operand.vmem [shape: f32[4,16,1], index: 19, kind: output, shape index: {0}]   ;;  %s4205_s20 = inlined_call_operand.vmem [shape: f32[4,16,3], index: 20, kind: output, shape index: {1}]  }
   0x1   :  { %4214 = sst [smem:[#allocation12_spill]] %s4185_s0 }
   0x2   :  { %4215 = sst [smem:[#allocation13_spill]] %s4186_s1 }
   0x3   :  { %4216 = sst [smem:[#allocation14_spill]] %s4187_s2 }
   0x4   :  { %4217 = sst [smem:[#allocation15_spill]] %s4188_s3 }
   0x5   :  { %4218 = sst [smem:[#allocation16_spill]] %s4189_s4 }
   0x6   :  { %4219 = sst [smem:[#allocation17_spill]] %s4199_s14 }
   0x7   :  { %4220 = sst [smem:[#allocation18_spill]] %s4200_s15 }
   0x8   :  { %4221 = sst [smem:[#allocation19_spill]] %s4201_s16 }
   0x9   :  { %26 = vsyncpa [#allocation5], 0  ;;  %s3500_s1 = smov 0   ;;  %s3502_s22 = smov 0  }
   0xa   :  { %s3504_s23 = smov 0   ;;  %s3506_s24 = smov 0  }
   0xb   :  { %s3508_s2 = smov 0  }
   0xc LB: > { %4222 = sst [smem:[#allocation7_spill]] %s3376_s23  ;;  %s2934_s25 = sadd.s32 4294967295, %s3384_s2   ;;  %s3384_s2 = sphi %s3508_s2, %s32_s2   ;;  %s3380_s24 = sphi %s3506_s24, %s4244_s24   ;;  %s3376_s23 = sphi %s3504_s23, %s4243_s23   ;;  %s3372_s22 = sphi %s3502_s22, %s4242_s22   ;;  %s3368_s1 = sphi %s3500_s1, %s4241_s1  }
   0xd   : > { %4223 = sst [smem:[#allocation8_spill]] %s3380_s24  ;;  %s41_s3 = sadd.s32 1, %s3376_s23 }
   0xe   : > { %4224 = sst [smem:[#allocation9_spill]] %s3384_s2  ;;  %p42_p0 = scmp.ge.s32.totalorder %s41_s3, 2 }
   0xf   : > { %s44_s26 = sadd.s32 1, %s3380_s24  ;;  %p2936_p1 = scmp.ge.s32.totalorder %s3384_s2, 1 }
  0x10   : > { %p515_p2 = scmp.lt.s32.totalorder %s3384_s2, 5  ;;  %s4246_s3 = smov (%p42_p0, %s41_s3), 0 }
  0x11   : > { %4225 = sst [smem:[#allocation10_spill]] %s4246_s3  ;;  %s4248_s26 = smov (!%p42_p0, %s44_s26), %s3380_s24 }
  0x12   : > { %p3533_p3 = pnand %p2936_p1, %p515_p2  ;;  %p46_p4 = scmp.ge.s32.totalorder %s4248_s26, 2 }
  0x13   : > { %p3537_p5 = scmp.eq.s32.totalorder %s2934_s25, 0  ;;  %s3386_s4 = smov [#allocation4]  }
  0x14   : > { %s4226_s27 = scalar_select %p3533_p3, 1, 0 }
  0x15   : > { %s4227_s28 = scalar_select %p3537_p5, 1, 0 }
  0x16   : > { %p3183_p6 = pneg %p3533_p3  ;;  %s4250_s26 = smov (%p46_p4, %s4248_s26), 0 }
  0x17   : > { %4228 = sst [smem:[#allocation11_spill]] %s4250_s26  ;;  %s527_s29 = sshll.u32 %s3386_s4, 4  ;;  %s528_s29 = int_to_ptr.vmem [resolvable:$true] %s527_s29 }
  0x18   : > { %p3547_p7 = pnand %p3537_p5, %p3183_p6  ;;  %s4230_s25 = sld [smem:[#allocation13_spill]] }
  0x1a   : > { %p3316_p9 = pneg %p3547_p7 }
  0x1e   : > { %s3314_s3 = scalar_lea.hbm %s4230_s25, 32 }
  0x1f   : > { %p3315_p8 = scmp.ne.s32.totalorder %s4230_s25, %s3314_s3  ;;  %p3321_p12 = scmp.lt.u32.totalorder %s3314_s3, %s4230_s25 }
  0x21   : > { %p3317_p10 = pnand %p3316_p9, %p3315_p8 }
  0x23   : > { %p3318_p11 = pneg %p3317_p10 }
  0x25   : > { %p3323_p13 = pnand %p3321_p12, %p3318_p11 }
  0x27   : > { %3326 = shalt.err (!%p3323_p13)
}
  0x28   : > { %s3327_s2 = scalar_lea.vmem %s528_s29, 32  ;;  %p3335_p4 = scmp.lt.s32.totalorder %s528_s29, %s528_s29 }
  0x29   : > { %p3328_p0 = scmp.ne.s32.totalorder %s528_s29, %s3327_s2  ;;  %p3336_p6 = scmp.lt.s32.totalorder %s3327_s2, %s3327_s2 }
  0x2b   : > { %p3330_p1 = pnand %p3328_p0, %p3316_p9  ;;  %p3337_p5 = por %p3336_p6, %p3335_p4 }
  0x2d   : > { %p3331_p2 = pneg %p3330_p1 }
  0x2f   : > { %p3338_p3 = pnand %p3337_p5, %p3331_p2 }
  0x31   : > { %3341 = shalt.err (!%p3338_p3)
}
  0x32   : > { %s3387_s23 = smov 16   ;;  %s3388_s24 = smov 1  }
  0x33   : > { %3186 = dma.hbm_to_vmem [thread:$0]  (!%p3547_p7), %s4230_s25, 32, %s528_s29, [#allocation5], %s3387_s23, %s3387_s23, %s3388_s24  }
  0x34   : > { %p4231_p8 = scmp.ne.s32.totalorder %s4226_s27, 0 }
  0x35   : > { %p4232_p10 = scmp.ne.s32.totalorder (!%p4231_p8), %s4227_s28, 0 }
  0x36   : > { %618 = sbr.rel (%p4231_p8) target bundleno = 3603 (0xe13), region = 96 }
  0x3d   : > { %3363 = dma.done.wait (%p4232_p10), [#allocation5], 32  }
  0x3e   : > { %3365 = vsyncadd (%p4232_p10), [#allocation5], 4294967264  ;;  %s2941_s2 = sshll.u32 %s3372_s22, 1  ;;  %s4233_s16 = sld [smem:[#allocation12_spill]] }
  0x3f   : > { %p697_p3 = scmp.lt.s32.totalorder %s2941_s2, 3  ;;  %p2956_p5 = scmp.ne.s32.totalorder %s3368_s1, 0 }
  0x40   : > { %vm740_vm0 = vcmask (!%p2956_p5), 523264  }
  0x41   : > { %s4252_s2 = smov (!%p697_p3, %s2941_s2), 3  ;;  %735 = sbr.rel (%p2956_p5) target bundleno = 72 (0x48), region = 104 }
  0x42   : > { %s3015_s3 = sshll.u32 %s4252_s2, 4  ;;  %s3017_s26 = sshll.u32 %s4252_s2, 6 }
  0x43   : > { %s3580_s27 = scalar_lea.vmem %s4202_s17, %s3015_s3  ;;  %s3585_s28 = scalar_lea.vmem %s4203_s18, %s3017_s26 }
  0x44   : > { %s701_s0 = scalar_lea.vmem %s4233_s16, %s3015_s3  ;;  %s3590_s15 = scalar_lea.vmem %s4204_s19, %s3015_s3 }
  0x45   : > { %s3595_s30 = scalar_lea.vmem %s4205_s20, %s3015_s3  ;;  %v736_v0 = vld [vmem:[%s701_s0] sm:$0xff] (!%p2956_p5)  ;;  %v737_v1 = vld [vmem:[%s701_s0 + $0x8] sm:$0xff] (!%p2956_p5)  ;;  %v738_v2 = vld [vmem:[%s701_s0 + $0x10] sm:$0xff] (!%p2956_p5) }
  0x46   : > { %741 = vst.msk [vmem:[#allocation2] sm:$0xff] (!%p2956_p5), %vm740_vm0, %v736_v0  ;;  %742 = vst.msk [vmem:[#allocation2 + $0x8] sm:$0xff] (!%p2956_p5), %vm740_vm0, %v737_v1  ;;  %v739_v3 = vld [vmem:[%s701_s0 + $0x18] sm:$0xff] (!%p2956_p5) }
  0x47   : > { %743 = vst.msk [vmem:[#allocation2 + $0x10] sm:$0xff] (!%p2956_p5), %vm740_vm0, %v738_v2  ;;  %744 = vst.msk [vmem:[#allocation2 + $0x18] sm:$0xff] (!%p2956_p5), %vm740_vm0, %v739_v3 }
  0x48 PF: > { %vm753_vm1 = vcmask 523264   ;;  %s3623_s14 = sshll.u32 %s3368_s1, 5  ;;  %s4234_s0 = sld [smem:[#allocation15_spill]]  ;;  %v3389_v42 = vmov 0.0   ;;  %vm1037_vm2 = vcmask 261120   ;;  %vm3390_vm3 = vmmov 0  }
  0x49   : > { %s930_s3 = scalar_lea.vmem %s4190_s5, %s3623_s14  ;;  %s749_s23 = scalar_lea.vmem [#allocation4], %s3368_s1  ;;  %vm1144_vm5 = vcmask 130048   ;;  %vm1553_vm7 = vcmask 523520  }
  0x4a   : > { %v3238_v32 = vld [vmem:[%s930_s3] sm:$0xff]   ;;  %v3239_v33 = vld [vmem:[%s930_s3 + $0x8] sm:$0xff]   ;;  %v3240_v34 = vld [vmem:[%s930_s3 + $0x10] sm:$0xff]   ;;  %s4235_s22 = sld [smem:[#allocation14_spill]]  ;;  %s3392_s24 = smov 96  }
  0x4b   : > { %3083 = vmatprep.subr.bf16.mxu1 %v3238_v32  ;;  %v3242_v36 = vld [vmem:[%s930_s3 + $0x18] sm:$0xff]   ;;  %v2957_v57 = vld [vmem:[%s749_s23] ss:$0 sm:$0xff]  ;;  %s939_s3 = scalar_lea.vmem %s4191_s6, %s3368_s1  ;;  %s3391_s23 = smov 64  }
  0x4c   : > { %3084 = vmatpush3.bf16.msra.mxu1 %v3238_v32  ;;  %s3393_s21 = smov 32   ;;  %s1559_s16 = scalar_lea.vmem %s4192_s7, %s3623_s14 }
  0x4d   : > { %v745_v4 = vld [vmem:[#allocation2] sm:$0xff]  ;;  %v746_v6 = vld [vmem:[#allocation2 + $0x8] sm:$0xff]  ;;  %3085 = vmatprep.subr.bf16.mxu1 %v3239_v33  ;;  %s1568_s26 = scalar_lea.vmem %s4193_s8, %s3368_s1  ;;  %p3010_p7 = scmp.ne.s32.totalorder %s3368_s1, 1 }
  0x4e   : > { %v747_v5 = vld [vmem:[#allocation2 + $0x10] sm:$0xff]  ;;  %v754_v7 = vsel %vm753_vm1, %v745_v4, 0.0  ;;  %v748_v9 = vld [vmem:[#allocation2 + $0x18] sm:$0xff]  ;;  %v757_v10 = vsel %vm753_vm1, %v746_v6, 0.0  ;;  %s831_s29 = scalar_lea.vmem %s4234_s0, %s3623_s14  ;;  %v927_v37 = vpack.c.bf16 %v746_v6, %v745_v4  ;;  %s4236_s0 = sld [smem:[#allocation16_spill]]  ;;  %vm2472_vm8 = vcmask (!%p3010_p7), 518144  }
  0x4f   : > { %v760_v8 = vsel %vm753_vm1, %v747_v5, 0.0  ;;  %755 = vadd.xlane.f32.xlu0 %v754_v7  ;;  %v763_v11 = vsel %vm753_vm1, %v748_v9, 0.0  ;;  %v3241_v35 = vld [vmem:[%s831_s29] sm:$0xff]   ;;  %v3243_v38 = vld [vmem:[%s831_s29 + $0x8] sm:$0xff]   ;;  %v928_v39 = vpack.c.bf16 %v748_v9, %v747_v5  ;;  %v3244_v40 = vld [vmem:[%s831_s29 + $0x10] sm:$0xff]   ;;  %s4239_s25 = sld [smem:[#allocation19_spill]] (!%p3010_p7) }
  0x50   : > { %761 = vadd.xlane.f32.xlu1 %v760_v8  ;;  %3086 = vmatpush3.bf16.msra.mxu1 %v3239_v33  ;;  %v3245_v41 = vld [vmem:[%s831_s29 + $0x18] sm:$0xff]   ;;  %s751_s2 = scalar_lea.vmem %s4235_s22, %s3368_s1  ;;  %s4238_s22 = sld [smem:[#allocation18_spill]] (!%p3010_p7)  ;;  %vm2043_vm9 = vcmask (!%p3010_p7), 7168   ;;  %vm2729_vm10 = vcmask (!%p3010_p7), 1041409   ;;  %vm2731_vm11 = vcmask (!%p3010_p7), 1042434   ;;  %vm2733_vm12 = vcmask (!%p3010_p7), 1043459  }
  0x51   : > { %3087 = vmatprep.subr.bf16.mxu1 %v3240_v34  ;;  %3071 = vmatprep.subr.bf16.mxu0 %v3241_v35  ;;  %v2958_v63 = vld [vmem:[%s751_s2] ss:$0 sm:$0xff]  ;;  %s1659_s2 = scalar_lea.vmem %s4194_s9, %s3368_s1  ;;  %vm2735_vm13 = vcmask (!%p3010_p7), 1044484   ;;  %vm2737_vm14 = vcmask (!%p3010_p7), 1045509   ;;  %vm2739_vm15 = vcmask (!%p3010_p7), 1046534   ;;  %vm2741_vm0 = vcmask (!%p3010_p7), 1047559  }
  0x52   : > { %3072 = vmatpush3.bf16.msra.mxu0 %v3241_v35  ;;  %3091 = vmatprep.mubr.msk.bf16.mxu1 %vm753_vm1, %v927_v37  ;;  %v1026_v35 = vlaneseq }
  0x53   : > { %758 = vadd.xlane.f32.xlu0 %v757_v10  ;;  %3073 = vmatprep.subr.bf16.mxu0 %v3243_v38 }
  0x54   : > { %764 = vadd.xlane.f32.xlu1 %v763_v11  ;;  %3088 = vmatpush3.bf16.msra.mxu1 %v3240_v34  ;;  %v2969_v11 = vld [vmem:[%s939_s3] ss:$0 sm:$0xff]  ;;  %s840_s29 = scalar_lea.vmem %s4236_s0, %s3368_s1  ;;  %v3696_v37 = vand.u32 127, %v1026_v35  ;;  %s1661_s3 = scalar_lea.vmem %s4195_s10, %s3368_s1 }
  0x55   : > { %3089 = vmatprep.subr.bf16.mxu1 %v3242_v36  ;;  %s1747_s0 = scalar_lea.vmem %s4197_s12, %s3368_s1 }
  0x56   : > { %3074 = vmatpush3.bf16.msra.mxu0 %v3243_v38 }
  0x57   : > { %3075 = vmatprep.subr.bf16.mxu0 %v3244_v40 }
  0x58   : > { %3090 = vmatpush3.bf16.msra.mxu1 %v3242_v36  ;;  %v3694_v36 = vshrl.u32 %v1026_v35, 7 }
  0x59   : > { %3095 = vmatprep.subr.bf16.mxu1 %v3389_v42 }
  0x5a   : > { %3076 = vmatpush3.bf16.msra.mxu0 %v3244_v40  ;;  %v3699_v38 = vadd.s32 8, %v3694_v36  ;;  %vm1031_vm4 = vcmp.gt.s32.totalorder %v3696_v37, %v3694_v36 }
  0x5b   : > { %3092 = vmatmul.mubr.msk.bf16.vlgmr.msra.gmra.mrb[0].mxu1 %vm753_vm1, %v928_v39  ;;  %3077 = vmatprep.subr.bf16.mxu0 %v3245_v41 }
  0x5c   : > { %3097 = vmatprep.mubr.msk.bf16.mxu1 %vm3390_vm3, %v3389_v42  ;;  %vm1032_vm6 = vcmp.gt.s32.totalorder %v3696_v37, %v3699_v38 }
  0x5e   : > { %3078 = vmatpush3.bf16.msra.mxu0 %v3245_v41 }
  0x5f   : > { %3107 = vmatprep.subr.bf16.mxu0 %v3389_v42 }
  0xdc   : > { %v756_v12 = vpop.xlane.xlu0 %755 }
  0xdd   : > { %v762_v13 = vpop.xlane.xlu1 %761  ;;  %v767_v14 = vmul.f32 0.015625, %v756_v12 }
  0xde   : > { %v769_v15 = vmul.f32 0.015625, %v762_v13 }
  0xdf   : > { %v3602_v16 = vsub.f32 %v745_v4, %v767_v14 }
  0xe0   : > { %v3604_v17 = vsub.f32 %v747_v5, %v769_v15  ;;  %v759_v18 = vpop.xlane.xlu0 %758 }
  0xe1   : > { %v765_v19 = vpop.xlane.xlu1 %764  ;;  %v768_v20 = vmul.f32 0.015625, %v759_v18  ;;  %v775_v22 = vmul.f32 %v3602_v16, %v3602_v16 }
  0xe2   : > { %v770_v21 = vmul.f32 0.015625, %v765_v19  ;;  %v777_v23 = vmul.f32 %v3604_v17, %v3604_v17 }
  0xe3   : > { %v3610_v24 = vsub.f32 %v746_v6, %v768_v20  ;;  %v779_v26 = vsel %vm753_vm1, %v775_v22, 0.0 }
  0xe4   : > { %v3612_v25 = vsub.f32 %v748_v9, %v770_v21  ;;  %780 = vadd.xlane.f32.xlu0 %v779_v26  ;;  %v785_v27 = vsel %vm753_vm1, %v777_v23, 0.0 }
  0xe5   : > { %v776_v28 = vmul.f32 %v3610_v24, %v3610_v24 }
  0xe6   : > { %v778_v29 = vmul.f32 %v3612_v25, %v3612_v25 }
  0xe7   : > { %v782_v30 = vsel %vm753_vm1, %v776_v28, 0.0 }
  0xe8   : > { %786 = vadd.xlane.f32.xlu0 %v785_v27  ;;  %783 = vadd.xlane.f32.xlu1 %v782_v30  ;;  %v788_v31 = vsel %vm753_vm1, %v778_v29, 0.0 }
  0xec   : > { %789 = vadd.xlane.f32.xlu1 %v788_v31 }
 0x12e   : > { %v3093_v12 = vpop.f32.mrb[0].mxu1 }
 0x12f   : > { %v1020_v13 = vadd.f32 %v3093_v12, %v2969_v11  ;;  %v1011_v14 = vpop.f32.mrb[1].mxu1 }
 0x130   : > { %v1012_v15 = vadd.f32 %v2969_v11, %v1011_v14 }
 0x171   : > { %v781_v43 = vpop.xlane.xlu0 %780 }
 0x172   : > { %v791_v44 = vmul.f32 0.015625, %v781_v43 }
 0x174   : > { %v795_v45 = vadd.f32 1e-08, %v791_v44 }
 0x175   : > { %v784_v46 = vpop.xlane.xlu1 %783  ;;  %v787_v47 = vpop.xlane.xlu0 %786 }
 0x176   : > { %3258 = vrsqrt.f32 %v795_v45  ;;  %v792_v48 = vmul.f32 0.015625, %v784_v46  ;;  %v793_v49 = vmul.f32 0.015625, %v787_v47 }
 0x178   : > { %v796_v50 = vadd.f32 1e-08, %v792_v48  ;;  %v797_v51 = vadd.f32 1e-08, %v793_v49 }
 0x179   : > { %v790_v52 = vpop.xlane.xlu1 %789 }
 0x17a   : > { %3260 = vrsqrt.f32 %v796_v50  ;;  %v794_v53 = vmul.f32 0.015625, %v790_v52 }
 0x17b   : > { %3262 = vrsqrt.f32 %v797_v51 }
 0x17c   : > { %v798_v54 = vadd.f32 1e-08, %v794_v53 }
 0x17e   : > { %3264 = vrsqrt.f32 %v798_v54 }
 0x180   : > { %v3259_v55 = vpop.eup %3258 }
 0x181   : > { %v803_v56 = vmul.f32 %v3259_v55, %v3602_v16  ;;  %v3094_v16 = vpop.f32.mrb[2].mxu1 }
 0x182   : > { %v1014_v18 = vpop.f32.mrb[3].mxu1 }
 0x183   : > { %v813_v61 = vmul.f32 %v2957_v57, %v803_v56  ;;  %v1015_v19 = vadd.f32 %v2969_v11, %v1014_v18 }
 0x184   : > { %v3261_v58 = vpop.eup %3260 }
 0x185   : > { %v3263_v59 = vpop.eup %3262  ;;  %v804_v60 = vmul.f32 %v3261_v58, %v3610_v24  ;;  %v3646_v3 = vadd.f32 %v2958_v63, %v813_v61  ;;  %v3666_v21 = vpack.c.bf16 %v1015_v19, %v1012_v15  ;;  %v2961_v24 = vld [vmem:[%s840_s29] ss:$0 sm:$0xff]  ;;  %s1738_s29 = scalar_lea.vmem %s4196_s11, %s3623_s14 }
 0x186   : > { %v805_v62 = vmul.f32 %v3263_v59, %v3604_v17  ;;  %v1023_v17 = vadd.f32 %v3094_v16, %v2969_v11 }
 0x187   : > { %v814_v0 = vmul.f32 %v2957_v57, %v804_v60  ;;  %v1042_v22 = vsel %vm1037_vm2, %v3666_v21, 0 }
 0x188   : > { %v3265_v1 = vpop.eup %3264  ;;  %v815_v5 = vmul.f32 %v2957_v57, %v805_v62  ;;  %v3664_v20 = vpack.c.bf16 %v1023_v17, %v1020_v13  ;;  %3096 = vmatpush3.bf16.xpose.msra.mxu1 %v1042_v22 }
 0x189   : > { %v806_v2 = vmul.f32 %v3265_v1, %v3612_v25  ;;  %v3648_v4 = vadd.f32 %v2958_v63, %v814_v0  ;;  %3101 = vmatprep.subr.bf16.mxu1 %v3389_v42 }
 0x18a   : > { %v3653_v8 = vadd.f32 %v2958_v63, %v815_v5  ;;  %v1089_v34 = vsel %vm1037_vm2, %v3664_v20, 0 }
 0x18b   : > { %v827_v6 = vpack.c.bf16 %v3648_v4, %v3646_v3  ;;  %v816_v7 = vmul.f32 %v2957_v57, %v806_v2 }
 0x18d   : > { %3079 = vmatprep.mubr.msk.bf16.mxu0 %vm753_vm1, %v827_v6  ;;  %v3655_v9 = vadd.f32 %v2958_v63, %v816_v7 }
 0x18f   : > { %v828_v10 = vpack.c.bf16 %v3655_v9, %v3653_v8 }
 0x191   : > { %3080 = vmatmul.mubr.msk.bf16.vlgmr.msra.gmra.mrb[0].mxu0 %vm753_vm1, %v828_v10 }
 0x192   : > { %3109 = vmatprep.mubr.msk.bf16.mxu0 %vm3390_vm3, %v3389_v42 }
 0x264   : > { %v3081_v23 = vpop.f32.mrb[0].mxu0 }
 0x265   : > { %v912_v25 = vpop.f32.mrb[1].mxu0  ;;  %v921_v27 = vadd.f32 %v3081_v23, %v2961_v24 }
 0x266   : > { %v3082_v26 = vpop.f32.mrb[2].mxu0  ;;  %v913_v30 = vadd.f32 %v2961_v24, %v912_v25 }
 0x267   : > { %v924_v28 = vadd.f32 %v3082_v26, %v2961_v24  ;;  %v915_v29 = vpop.f32.mrb[3].mxu0 }
 0x268   : > { %v916_v31 = vadd.f32 %v2961_v24, %v915_v29 }
 0x269   : > { %v3679_v32 = vpack.c.bf16 %v924_v28, %v921_v27 }
 0x26a   : > { %v3681_v33 = vpack.c.bf16 %v916_v31, %v913_v30 }
 0x26c   : > { %3098 = vmatmul.mubr.msk.bf16.vlgmr.msra.gmra.mrb[4].mxu1 %vm1037_vm2, %v3681_v33 }
 0x26d   : > { %3102 = vmatpush3.bf16.xpose.msra.mxu1 %v1089_v34  ;;  %3103 = vmatprep.mubr.msk.bf16.mxu1 %vm3390_vm3, %v3389_v42 }
 0x26e   : > { %3113 = vmatprep.subr.bf16.mxu1 %v3389_v42 }
 0x274   : > { %3104 = vmatmul.mubr.msk.bf16.vlgmr.msra.gmra.mrb[8].mxu1 %vm1037_vm2, %v3679_v32 }
 0x275   : > { %3115 = vmatprep.mubr.msk.bf16.mxu1 %vm3390_vm3, %v3389_v42 }
 0x33f   : > { %v1078_v39 = vpop.f32.mrb[4].mxu1 }
 0x340   : > { %v1132_v40 = vmul.f32 0.17677669, %v1078_v39  ;;  %v3099_v41 = vpop.f32.mrb[5].mxu1 }
 0x341   : > { %v1081_v43 = vpop.f32.mrb[6].mxu1 }
 0x342   : > { %v1133_v44 = vmul.f32 0.17677669, %v1081_v43  ;;  %v3100_v45 = vpop.f32.mrb[7].mxu1  ;;  %v1140_v46 = vsel %vm1031_vm4, -1e+30, %v1132_v40 }
 0x343   : > { %v1145_v47 = vsel %vm1144_vm5, %v1140_v46, -inf }
 0x344   : > { %1146 = vmax.xlane.f32.xlu0 %v1145_v47  ;;  %v1141_v48 = vsel %vm1032_vm6, -1e+30, %v1133_v44 }
 0x345   : > { %v1148_v49 = vsel %vm1144_vm5, %v1141_v48, -inf }
 0x346   : > { %1149 = vmax.xlane.f32.xlu1 %v1148_v49 }
 0x347   : > { %v1125_v50 = vpop.f32.mrb[8].mxu1 }
 0x348   : > { %v1134_v51 = vmul.f32 0.17677669, %v1125_v50  ;;  %v3105_v52 = vpop.f32.mrb[9].mxu1 }
 0x349   : > { %v1128_v53 = vpop.f32.mrb[10].mxu1 }
 0x34a   : > { %v1135_v54 = vmul.f32 0.17677669, %v1128_v53  ;;  %v3106_v55 = vpop.f32.mrb[11].mxu1  ;;  %v1142_v56 = vsel %vm1031_vm4, -1e+30, %v1134_v51 }
 0x34b   : > { %v1151_v57 = vsel %vm1144_vm5, %v1142_v56, -inf }
 0x34c   : > { %1152 = vmax.xlane.f32.xlu0 %v1151_v57  ;;  %v1143_v58 = vsel %vm1032_vm6, -1e+30, %v1135_v54 }
 0x34d   : > { %v1154_v59 = vsel %vm1144_vm5, %v1143_v58, -inf }
 0x34e   : > { %1155 = vmax.xlane.f32.xlu1 %v1154_v59 }
 0x3d1   : > { %v1147_v60 = vpop.xlane.xlu0 %1146 }
 0x3d2   : > { %v1157_v61 = vsub.f32 %v1140_v46, %v1147_v60 }
 0x3d3   : > { %v1150_v62 = vpop.xlane.xlu1 %1149 }
 0x3d4   : > { %v1161_v63 = vmul.f32 1.442695, %v1157_v61  ;;  %v1158_v0 = vsub.f32 %v1141_v48, %v1150_v62 }
 0x3d6   : > { %3266 = vpow2.f32 %v1161_v63  ;;  %v1163_v1 = vmul.f32 1.442695, %v1158_v0 }
 0x3d8   : > { %3268 = vpow2.f32 %v1163_v1 }
 0x3d9   : > { %v1153_v2 = vpop.xlane.xlu0 %1152 }
 0x3da   : > { %v1159_v5 = vsub.f32 %v1142_v56, %v1153_v2 }
 0x3db   : > { %v1156_v15 = vpop.xlane.xlu1 %1155 }
 0x3dc   : > { %v1165_v6 = vmul.f32 1.442695, %v1159_v5  ;;  %v1160_v16 = vsub.f32 %v1143_v58, %v1156_v15 }
 0x3de   : > { %3270 = vpow2.f32 %v1165_v6  ;;  %v1167_v17 = vmul.f32 1.442695, %v1160_v16 }
 0x3e0   : > { %v3267_v7 = vpop.eup %3266  ;;  %3272 = vpow2.f32 %v1167_v17 }
 0x3e1   : > { %v1169_v10 = vsel %vm1144_vm5, %v3267_v7, 0.0 }
 0x3e2   : > { %v3269_v11 = vpop.eup %3268  ;;  %1170 = vadd.xlane.f32.xlu0 %v1169_v10 }
 0x3e3   : > { %v1172_v12 = vsel %vm1144_vm5, %v3269_v11, 0.0 }
 0x3e4   : > { %1173 = vadd.xlane.f32.xlu1 %v1172_v12 }
 0x3e8   : > { %v3271_v13 = vpop.eup %3270 }
 0x3e9   : > { %v1175_v14 = vsel %vm1144_vm5, %v3271_v13, 0.0 }
 0x3ea   : > { %1176 = vadd.xlane.f32.xlu0 %v1175_v14  ;;  %v3273_v18 = vpop.eup %3272 }
 0x3eb   : > { %v1178_v19 = vsel %vm1144_vm5, %v3273_v18, 0.0 }
 0x3f5   : > { %1240 = vrot.lane.b32.xlu1 %v3664_v20, %s3391_s23 }
 0x3f9   : > { %1294 = vrot.lane.b32.xlu1 %v3666_v21, %s3392_s24 }
 0x400   : > { %1192 = vrot.lane.b32.xlu0 %v3666_v21, %s3391_s23 }
 0x404   : > { %1292 = vrot.lane.b32.xlu0 %v3681_v33, %s3392_s24 }
 0x41d   : > { %1179 = vadd.xlane.f32.xlu1 %v1178_v19 }
 0x42e   : > { %1346 = vrot.lane.b32.xlu1 %v3664_v20, %s3392_s24 }
 0x432   : > { %1344 = vrot.lane.b32.xlu1 %v3679_v32, %s3392_s24  ;;  %s4237_s24 = sld [smem:[#allocation17_spill]] }
 0x46f   : > { %v1171_v22 = vpop.xlane.xlu0 %1170 }
 0x470   : > { %3274 = vrcp.f32 %v1171_v22 }
 0x471   : > { %v1174_v23 = vpop.xlane.xlu1 %1173 }
 0x472   : > { %3276 = vrcp.f32 %v1174_v23 }
 0x475   : > { %v1241_v24 = vpop.permute.xlu1 %1240 }
 0x476   : > { %3114 = vmatpush3.bf16.msra.mxu1 %v1241_v24 }
 0x477   : > { %v1177_v25 = vpop.xlane.xlu0 %1176  ;;  %3125 = vmatprep.subr.bf16.mxu1 %v3389_v42 }
 0x478   : > { %3278 = vrcp.f32 %v1177_v25 }
 0x479   : > { %v1295_v33 = vpop.permute.xlu1 %1294 }
 0x47a   : > { %v3275_v26 = vpop.eup %3274  ;;  %v1300_v32 = vsel %vm1037_vm2, %v1295_v33, 0 }
 0x47b   : > { %v1193_v27 = vpop.permute.xlu0 %1192  ;;  %v1185_v29 = vmul.f32 %v3275_v26, %v3267_v7 }
 0x47c   : > { %v3277_v28 = vpop.eup %3276  ;;  %3108 = vmatpush3.bf16.msra.mxu0 %v1193_v27 }
 0x47d   : > { %v1186_v30 = vmul.f32 %v3277_v28, %v3269_v11  ;;  %3119 = vmatprep.subr.bf16.mxu0 %v3389_v42 }
 0x47f   : > { %v1189_v31 = vpack.c.bf16 %v1186_v30, %v1185_v29  ;;  %v1293_v34 = vpop.permute.xlu0 %1292 }
 0x481   : > { %3110 = vmatmul.mubr.msk.bf16.vlgmr.msra.gmra.mrb[4].mxu0 %vm1144_vm5, %v1189_v31 }
 0x482   : > { %3121 = vmatprep.mubr.msk.bf16.mxu0 %vm3390_vm3, %v3389_v42  ;;  %v3279_v39 = vpop.eup %3278 }
 0x483   : > { %v1187_v41 = vmul.f32 %v3279_v39, %v3271_v13 }
 0x485   : > { %3120 = vmatpush3.bf16.xpose.msra.mxu0 %v1300_v32 }
 0x486   : > { %3131 = vmatprep.subr.bf16.mxu0 %v3389_v42 }
 0x48c   : > { %3122 = vmatmul.mubr.msk.bf16.vlgmr.msra.gmra.mrb[8].mxu0 %vm1037_vm2, %v1293_v34 }
 0x48d   : > { %3133 = vmatprep.mubr.msk.bf16.mxu0 %vm3390_vm3, %v3389_v42 }
 0x4aa   : > { %v1180_v35 = vpop.xlane.xlu1 %1179 }
 0x4ab   : > { %3280 = vrcp.f32 %v1180_v35 }
 0x4ae   : > { %v1347_v44 = vpop.permute.xlu1 %1346 }
 0x4af   : > { %v1352_v46 = vsel %vm1037_vm2, %v1347_v44, 0 }
 0x4b2   : > { %v1345_v47 = vpop.permute.xlu1 %1344 }
 0x4b5   : > { %v3281_v40 = vpop.eup %3280 }
 0x4b6   : > { %v1188_v43 = vmul.f32 %v3281_v40, %v3273_v18 }
 0x4b8   : > { %v1190_v45 = vpack.c.bf16 %v1188_v43, %v1187_v41 }
 0x4ba   : > { %3116 = vmatmul.mubr.msk.bf16.vlgmr.msra.gmra.mrb[12].mxu1 %vm1144_vm5, %v1190_v45 }
 0x4bb   : > { %3126 = vmatpush3.bf16.xpose.msra.mxu1 %v1352_v46  ;;  %3127 = vmatprep.mubr.msk.bf16.mxu1 %vm3390_vm3, %v3389_v42 }
 0x4bc   : > { %3137 = vmatprep.subr.bf16.mxu1 %v3389_v42 }
 0x4c2   : > { %3128 = vmatmul.mubr.msk.bf16.vlgmr.msra.gmra.mrb[16].mxu1 %vm1037_vm2, %v1345_v47 }
 0x4c3   : > { %3139 = vmatprep.mubr.msk.bf16.mxu1 %vm3390_vm3, %v3389_v42 }
 0x554   : > { %v1232_v48 = vpop.f32.mrb[4].mxu0 }
 0x555   : > { %v3111_v49 = vpop.f32.mrb[5].mxu0 }
 0x556   : > { %v1235_v50 = vpop.f32.mrb[6].mxu0 }
 0x557   : > { %v1287_v51 = vpack.c.bf16 %v1235_v50, %v1232_v48  ;;  %v3112_v52 = vpop.f32.mrb[7].mxu0 }
 0x559   : > { %1289 = vst.msk [vmem:[#allocation3] sm:$0xff] %vm1037_vm2, %v1287_v51 }
 0x55f   : > { %v1336_v53 = vpop.f32.mrb[8].mxu0 }
 0x560   : > { %v1395_v54 = vmul.f32 0.17677669, %v1336_v53  ;;  %v3123_v55 = vpop.f32.mrb[9].mxu0 }
 0x561   : > { %v1339_v56 = vpop.f32.mrb[10].mxu0 }
 0x562   : > { %v1396_v57 = vmul.f32 0.17677669, %v1339_v56  ;;  %v3124_v58 = vpop.f32.mrb[11].mxu0  ;;  %v1399_v59 = vsel %vm1031_vm4, -1e+30, %v1395_v54  ;;  %v3246_v56 = vld [vmem:[%s1559_s16] sm:$0xff]  }
 0x563   : > { %v1403_v60 = vsel %vm1144_vm5, %v1399_v59, -inf }
 0x564   : > { %1404 = vmax.xlane.f32.xlu0 %v1403_v60  ;;  %v1400_v42 = vsel %vm1032_vm6, -1e+30, %v1396_v57  ;;  %v3247_v57 = vld [vmem:[%s1559_s16 + $0x8] sm:$0xff]  }
 0x565   : > { %v1406_v61 = vsel %vm1144_vm5, %v1400_v42, -inf }
 0x566   : > { %1407 = vmax.xlane.f32.xlu1 %v1406_v61 }
 0x58d   : > { %v1280_v62 = vpop.f32.mrb[12].mxu1 }
 0x58e   : > { %v3117_v63 = vpop.f32.mrb[13].mxu1 }
 0x58f   : > { %v1283_v0 = vpop.f32.mrb[14].mxu1  ;;  %v3249_v63 = vld [vmem:[%s1559_s16 + $0x18] sm:$0xff]  }
 0x590   : > { %v1288_v1 = vpack.c.bf16 %v1283_v0, %v1280_v62  ;;  %v3118_v2 = vpop.f32.mrb[15].mxu1  ;;  %v3248_v62 = vld [vmem:[%s1559_s16 + $0x10] sm:$0xff]  }
 0x592   : > { %1290 = vst.msk [vmem:[#allocation3 + $0x8] sm:$0xff] %vm1037_vm2, %v1288_v1 }
 0x595   : > { %v1388_v5 = vpop.f32.mrb[16].mxu1 }
 0x596   : > { %v1397_v6 = vmul.f32 0.17677669, %v1388_v5  ;;  %v3129_v7 = vpop.f32.mrb[17].mxu1 }
 0x597   : > { %v1391_v10 = vpop.f32.mrb[18].mxu1 }
 0x598   : > { %v1398_v11 = vmul.f32 0.17677669, %v1391_v10  ;;  %v3130_v12 = vpop.f32.mrb[19].mxu1  ;;  %v1401_v13 = vsel %vm1031_vm4, -1e+30, %v1397_v6 }
 0x599   : > { %v1409_v14 = vsel %vm1144_vm5, %v1401_v13, -inf }
 0x59a   : > { %1410 = vmax.xlane.f32.xlu0 %v1409_v14  ;;  %v1402_v15 = vsel %vm1032_vm6, -1e+30, %v1398_v11 }
 0x59b   : > { %v1412_v16 = vsel %vm1144_vm5, %v1402_v15, -inf }
 0x59e   : > { %1413 = vmax.xlane.f32.xlu0 %v1412_v16 }
 0x5f1   : > { %v1405_v17 = vpop.xlane.xlu0 %1404 }
 0x5f2   : > { %v1415_v18 = vsub.f32 %v1399_v59, %v1405_v17 }
 0x5f3   : > { %v1408_v19 = vpop.xlane.xlu1 %1407 }
 0x5f4   : > { %v1419_v22 = vmul.f32 1.442695, %v1415_v18  ;;  %v1416_v23 = vsub.f32 %v1400_v42, %v1408_v19 }
 0x5f6   : > { %3282 = vpow2.f32 %v1419_v22  ;;  %v1421_v24 = vmul.f32 1.442695, %v1416_v23 }
 0x5f8   : > { %3284 = vpow2.f32 %v1421_v24 }
 0x600   : > { %v3283_v25 = vpop.eup %3282 }
 0x601   : > { %v1427_v26 = vsel %vm1144_vm5, %v3283_v25, 0.0 }
 0x602   : > { %v3285_v27 = vpop.eup %3284  ;;  %1428 = vadd.xlane.f32.xlu0 %v1427_v26 }
 0x603   : > { %v1430_v28 = vsel %vm1144_vm5, %v3285_v27, 0.0 }
 0x604   : > { %1431 = vadd.xlane.f32.xlu1 %v1430_v28 }
 0x627   : > { %v1411_v38 = vpop.xlane.xlu0 %1410 }
 0x628   : > { %v1417_v29 = vsub.f32 %v1401_v13, %v1411_v38  ;;  %v2985_v13 = vld [vmem:[%s1568_s26] ss:$0 sm:$0xff] }
 0x62a   : > { %v1423_v30 = vmul.f32 1.442695, %v1417_v29 }
 0x62b   : > { %v1414_v31 = vpop.xlane.xlu0 %1413 }
 0x62c   : > { %3286 = vpow2.f32 %v1423_v30  ;;  %v1418_v33 = vsub.f32 %v1402_v15, %v1414_v31 }
 0x62e   : > { %v1425_v32 = vmul.f32 1.442695, %v1418_v33 }
 0x630   : > { %3288 = vpow2.f32 %v1425_v32 }
 0x636   : > { %v3287_v34 = vpop.eup %3286 }
 0x637   : > { %v1433_v35 = vsel %vm1144_vm5, %v3287_v34, 0.0 }
 0x638   : > { %1434 = vadd.xlane.f32.xlu0 %v1433_v35 }
 0x63a   : > { %v3289_v39 = vpop.eup %3288 }
 0x63b   : > { %v1436_v40 = vsel %vm1144_vm5, %v3289_v39, 0.0 }
 0x63c   : > { %1437 = vadd.xlane.f32.xlu1 %v1436_v40 }
 0x64d   : > { %1496 = vrot.lane.b32.xlu1 %v3664_v20, %s3393_s21 }
 0x64e   : > { %1449 = vrot.lane.b32.xlu0 %v3666_v21, %s3393_s21 }
 0x68f   : > { %v1429_v43 = vpop.xlane.xlu0 %1428 }
 0x691   : > { %v1432_v41 = vpop.xlane.xlu1 %1431 }
 0x692   : > { %3290 = vrcp.f32 %v1432_v41 }
 0x693   : > { %3292 = vrcp.f32 %v1429_v43 }
 0x69c   : > { %v3291_v44 = vpop.eup %3290 }
 0x69d   : > { %v3293_v46 = vpop.eup %3292  ;;  %v1444_v47 = vmul.f32 %v3291_v44, %v3285_v27 }
 0x69e   : > { %v1443_v48 = vmul.f32 %v3293_v46, %v3283_v25 }
 0x6a0   : > { %v1447_v51 = vpack.c.bf16 %v1444_v47, %v1443_v48 }
 0x6c5   : > { %v1435_v45 = vpop.xlane.xlu0 %1434 }
 0x6c6   : > { %3294 = vrcp.f32 %v1435_v45 }
 0x6c9   : > { %v1438_v49 = vpop.xlane.xlu1 %1437  ;;  %v1450_v50 = vpop.permute.xlu0 %1449 }
 0x6ca   : > { %3296 = vrcp.f32 %v1438_v49  ;;  %3132 = vmatpush3.bf16.msra.mxu0 %v1450_v50 }
 0x6cb   : > { %3143 = vmatprep.subr.bf16.mxu0 %v3246_v56 }
 0x6cd   : > { %v1497_v20 = vpop.permute.xlu1 %1496  ;;  %3134 = vmatmul.mubr.msk.bf16.vlgmr.msra.gmra.mrb[12].mxu0 %vm1144_vm5, %v1447_v51  ;;  %v3250_v51 = vld [vmem:[%s1738_s29] sm:$0xff]  }
 0x6ce   : > { %3138 = vmatpush3.bf16.msra.mxu1 %v1497_v20  ;;  %3144 = vmatpush3.bf16.msra.mxu0 %v3246_v56  ;;  %v3251_v20 = vld [vmem:[%s1738_s29 + $0x8] sm:$0xff]  }
 0x6cf   : > { %3145 = vmatprep.subr.bf16.mxu0 %v3247_v57  ;;  %3155 = vmatprep.subr.bf16.mxu1 %v3250_v51 }
 0x6d0   : > { %v3295_v21 = vpop.eup %3294 }
 0x6d1   : > { %v1445_v53 = vmul.f32 %v3295_v21, %v3287_v34  ;;  %v3252_v21 = vld [vmem:[%s1738_s29 + $0x10] sm:$0xff]  }
 0x6d2   : > { %3146 = vmatpush3.bf16.msra.mxu0 %v3247_v57 }
 0x6d3   : > { %3147 = vmatprep.subr.bf16.mxu0 %v3248_v62 }
 0x6d4   : > { %v3297_v52 = vpop.eup %3296 }
 0x6d5   : > { %v1446_v54 = vmul.f32 %v3297_v52, %v3289_v39  ;;  %v3253_v52 = vld [vmem:[%s1738_s29 + $0x18] sm:$0xff]  }
 0x6d6   : > { %3148 = vmatpush3.bf16.msra.mxu0 %v3248_v62 }
 0x6d7   : > { %v1448_v55 = vpack.c.bf16 %v1446_v54, %v1445_v53  ;;  %3149 = vmatprep.subr.bf16.mxu0 %v3249_v63 }
 0x6d9   : > { %3140 = vmatmul.mubr.msk.bf16.vlgmr.msra.gmra.mrb[20].mxu1 %vm1144_vm5, %v1448_v55 }
 0x6da   : > { %3150 = vmatpush3.bf16.msra.mxu0 %v3249_v63  ;;  %3156 = vmatpush3.bf16.msra.mxu1 %v3250_v51 }
 0x6db   : > { %3157 = vmatprep.subr.bf16.mxu1 %v3251_v20 }
 0x6de   : > { %3158 = vmatpush3.bf16.msra.mxu1 %v3251_v20 }
 0x6df   : > { %3159 = vmatprep.subr.bf16.mxu1 %v3252_v21 }
 0x6e2   : > { %3160 = vmatpush3.bf16.msra.mxu1 %v3252_v21 }
 0x6e3   : > { %3161 = vmatprep.subr.bf16.mxu1 %v3253_v52 }
 0x6e6   : > { %3162 = vmatpush3.bf16.msra.mxu1 %v3253_v52 }
 0x7a0   : > { %v1489_v58 = vpop.f32.mrb[12].mxu0 }
 0x7a1   : > { %v3135_v59 = vpop.f32.mrb[13].mxu0 }
 0x7a2   : > { %v1492_v60 = vpop.f32.mrb[14].mxu0 }
 0x7a3   : > { %v1543_v42 = vpack.c.bf16 %v1492_v60, %v1489_v58  ;;  %v3136_v61 = vpop.f32.mrb[15].mxu0 }
 0x7a5   : > { %1547 = vrot.lane.b32.xlu1 %v1543_v42, %s3393_s21 }
 0x7ac   : > { %v1536_v0 = vpop.f32.mrb[20].mxu1 }
 0x7ad   : > { %v3141_v1 = vpop.f32.mrb[21].mxu1 }
 0x7ae   : > { %v1539_v2 = vpop.f32.mrb[22].mxu1 }
 0x7af   : > { %v1544_v5 = vpack.c.bf16 %v1539_v2, %v1536_v0  ;;  %v3142_v6 = vpop.f32.mrb[23].mxu1 }
 0x7b1   : > { %1549 = vrot.lane.b32.xlu1 %v1544_v5, %s3393_s21  ;;  %s3809_s21 = scalar_lea.vmem %s4198_s13, %s3623_s14  ;;  %v2992_v5 = vld [vmem:[%s1659_s2] ss:$0 sm:$0xff] }
 0x7b2   : > { %v3254_v53 = vld [vmem:[%s3809_s21] sm:$0xff]   ;;  %v3255_v54 = vld [vmem:[%s3809_s21 + $0x8] sm:$0xff]  }
 0x7b3   : > { %3167 = vmatprep.subr.bf16.mxu0 %v3254_v53 }
 0x817   : > { %v1548_v7 = vpop.permute.xlu1 %1547 }
 0x818   : > { %1554 = vst.msk [vmem:[#allocation3] sm:$0xff] %vm1553_vm7, %v1548_v7 }
 0x81f   : > { %v1556_v10 = vld [vmem:[#allocation3] sm:$0xff] }
 0x820   : > { %3151 = vmatprep.mubr.msk.bf16.mxu0 %vm753_vm1, %v1556_v10 }
 0x823   : > { %v1550_v11 = vpop.permute.xlu1 %1549 }
 0x824   : > { %1555 = vst.msk [vmem:[#allocation3 + $0x8] sm:$0xff] %vm1553_vm7, %v1550_v11 }
 0x82b   : > { %v1557_v12 = vld [vmem:[#allocation3 + $0x8] sm:$0xff] }
 0x82c   : > { %3152 = vmatmul.mubr.msk.bf16.vlgmr.msra.gmra.mrb[16].mxu0 %vm753_vm1, %v1557_v12 }
 0x82d   : > { %3168 = vmatpush3.bf16.msra.mxu0 %v3254_v53 }
 0x82e   : > { %3169 = vmatprep.subr.bf16.mxu0 %v3255_v54 }
 0x831   : > { %3170 = vmatpush3.bf16.msra.mxu0 %v3255_v54 }
 0x8ff   : > { %v3153_v14 = vpop.f32.mrb[16].mxu0 }
 0x900   : > { %v1640_v15 = vpop.f32.mrb[17].mxu0  ;;  %v1649_v16 = vadd.f32 %v3153_v14, %v2985_v13 }
 0x901   : > { %v1641_v17 = vadd.f32 %v2985_v13, %v1640_v15  ;;  %v3154_v18 = vpop.f32.mrb[18].mxu0 }
 0x902   : > { %v1643_v19 = vpop.f32.mrb[19].mxu0  ;;  %v1652_v24 = vadd.f32 %v3154_v18, %v2985_v13  ;;  %v1657_v27 = vadd.f32 %v1649_v16, %v3653_v8 }
 0x903   : > { %v1644_v22 = vadd.f32 %v2985_v13, %v1643_v19  ;;  %v1655_v23 = vadd.f32 %v1641_v17, %v3646_v3  ;;  %v2993_v13 = vld [vmem:[%s1661_s3] ss:$0 sm:$0xff] }
 0x904   : > { %v1669_v38 = vsel %vm753_vm1, %v1657_v27, 0.0  ;;  %v1658_v29 = vadd.f32 %v1652_v24, %v3655_v9 }
 0x905   : > { %v1663_v25 = vsel %vm753_vm1, %v1655_v23, 0.0  ;;  %v1656_v26 = vadd.f32 %v1644_v22, %v3648_v4 }
 0x906   : > { %1664 = vadd.xlane.f32.xlu0 %v1663_v25  ;;  %v1672_v30 = vsel %vm753_vm1, %v1658_v29, 0.0 }
 0x907   : > { %v1666_v28 = vsel %vm753_vm1, %v1656_v26, 0.0 }
 0x908   : > { %1667 = vadd.xlane.f32.xlu1 %v1666_v28  ;;  %v3256_v28 = vld [vmem:[%s3809_s21 + $0x10] sm:$0xff]  }
 0x909   : > { %3171 = vmatprep.subr.bf16.mxu0 %v3256_v28 }
 0x90a   : > { %1670 = vadd.xlane.f32.xlu0 %v1669_v38  ;;  %3172 = vmatpush3.bf16.msra.mxu0 %v3256_v28  ;;  %v3257_v38 = vld [vmem:[%s3809_s21 + $0x18] sm:$0xff]   ;;  %s1850_s21 = scalar_lea.vmem %s4237_s24, %s3368_s1 }
 0x90b   : > { %3173 = vmatprep.subr.bf16.mxu0 %v3257_v38 }
 0x90e   : > { %1673 = vadd.xlane.f32.xlu0 %v1672_v30  ;;  %3174 = vmatpush3.bf16.msra.mxu0 %v3257_v38 }
 0x993   : > { %v1665_v3 = vpop.xlane.xlu0 %1664 }
 0x994   : > { %v1675_v31 = vmul.f32 0.015625, %v1665_v3 }
 0x995   : > { %v1668_v33 = vpop.xlane.xlu1 %1667 }
 0x996   : > { %v1679_v32 = vsub.f32 %v1655_v23, %v1675_v31  ;;  %v1676_v34 = vmul.f32 0.015625, %v1668_v33 }
 0x997   : > { %v1671_v4 = vpop.xlane.xlu0 %1670 }
 0x998   : > { %v1680_v35 = vsub.f32 %v1656_v26, %v1676_v34  ;;  %v1677_v8 = vmul.f32 0.015625, %v1671_v4  ;;  %v1683_v39 = vmul.f32 %v1679_v32, %v1679_v32 }
 0x99a   : > { %v1681_v40 = vsub.f32 %v1657_v27, %v1677_v8  ;;  %v1687_v41 = vsel %vm753_vm1, %v1683_v39, 0.0  ;;  %v1684_v43 = vmul.f32 %v1680_v35, %v1680_v35 }
 0x99b   : > { %1688 = vadd.xlane.f32.xlu0 %v1687_v41  ;;  %v1674_v9 = vpop.xlane.xlu0 %1673 }
 0x99c   : > { %v1678_v44 = vmul.f32 0.015625, %v1674_v9  ;;  %v1690_v45 = vsel %vm753_vm1, %v1684_v43, 0.0  ;;  %v1685_v46 = vmul.f32 %v1681_v40, %v1681_v40 }
 0x99d   : > { %1691 = vadd.xlane.f32.xlu1 %v1690_v45 }
 0x99e   : > { %v1682_v47 = vsub.f32 %v1658_v29, %v1678_v44  ;;  %v1693_v48 = vsel %vm753_vm1, %v1685_v46, 0.0  ;;  %v2995_v29 = vld [vmem:[%s1747_s0] ss:$0 sm:$0xff] }
 0x99f   : > { %1694 = vadd.xlane.f32.xlu0 %v1693_v48  ;;  %v3003_v44 = vld [vmem:[%s1850_s21] ss:$0 sm:$0xff] }
 0x9a0   : > { %v1686_v49 = vmul.f32 %v1682_v47, %v1682_v47 }
 0x9a2   : > { %v1696_v50 = vsel %vm753_vm1, %v1686_v49, 0.0 }
 0x9a3   : > { %1697 = vadd.xlane.f32.xlu1 %v1696_v50 }
 0xa28   : > { %v1689_v55 = vpop.xlane.xlu0 %1688 }
 0xa29   : > { %v1699_v56 = vmul.f32 0.015625, %v1689_v55 }
 0xa2a   : > { %v1692_v57 = vpop.xlane.xlu1 %1691 }
 0xa2b   : > { %v1703_v58 = vadd.f32 1e-08, %v1699_v56  ;;  %v1700_v59 = vmul.f32 0.015625, %v1692_v57 }
 0xa2c   : > { %v1695_v60 = vpop.xlane.xlu0 %1694 }
 0xa2d   : > { %3298 = vrsqrt.f32 %v1703_v58  ;;  %v1704_v42 = vadd.f32 1e-08, %v1700_v59  ;;  %v1701_v61 = vmul.f32 0.015625, %v1695_v60 }
 0xa2f   : > { %3300 = vrsqrt.f32 %v1704_v42  ;;  %v1705_v62 = vadd.f32 1e-08, %v1701_v61 }
 0xa30   : > { %v1698_v63 = vpop.xlane.xlu1 %1697 }
 0xa31   : > { %3302 = vrsqrt.f32 %v1705_v62  ;;  %v1702_v0 = vmul.f32 0.015625, %v1698_v63 }
 0xa33   : > { %v1706_v1 = vadd.f32 1e-08, %v1702_v0 }
 0xa35   : > { %3304 = vrsqrt.f32 %v1706_v1 }
 0xa37   : > { %v3299_v2 = vpop.eup %3298 }
 0xa38   : > { %v1711_v6 = vmul.f32 %v3299_v2, %v1679_v32 }
 0xa39   : > { %v3301_v7 = vpop.eup %3300 }
 0xa3a   : > { %v1712_v10 = vmul.f32 %v3301_v7, %v1680_v35  ;;  %v1721_v11 = vmul.f32 %v2992_v5, %v1711_v6 }
 0xa3b   : > { %v3303_v12 = vpop.eup %3302 }
 0xa3c   : > { %v1713_v14 = vmul.f32 %v3303_v12, %v1681_v40  ;;  %v1722_v15 = vmul.f32 %v2992_v5, %v1712_v10  ;;  %v1731_v16 = vadd.f32 %v2993_v13, %v1721_v11 }
 0xa3e   : > { %v1732_v17 = vadd.f32 %v2993_v13, %v1722_v15  ;;  %v1723_v19 = vmul.f32 %v2992_v5, %v1713_v14 }
 0xa3f   : > { %v3305_v18 = vpop.eup %3304 }
 0xa40   : > { %v1714_v22 = vmul.f32 %v3305_v18, %v1682_v47  ;;  %v1735_v23 = vpack.c.bf16 %v1732_v17, %v1731_v16  ;;  %v1733_v25 = vadd.f32 %v2993_v13, %v1723_v19 }
 0xa42   : > { %v1724_v24 = vmul.f32 %v2992_v5, %v1714_v22  ;;  %3163 = vmatprep.mubr.msk.bf16.mxu1 %vm753_vm1, %v1735_v23 }
 0xa44   : > { %v1734_v26 = vadd.f32 %v2993_v13, %v1724_v24 }
 0xa46   : > { %v1736_v27 = vpack.c.bf16 %v1734_v26, %v1733_v25 }
 0xa48   : > { %3164 = vmatmul.mubr.msk.bf16.vlgmr.msra.gmra.mrb[24].mxu1 %vm753_vm1, %v1736_v27 }
 0xb1b   : > { %v3165_v30 = vpop.f32.mrb[24].mxu1 }
 0xb1c   : > { %v1828_v3 = vadd.f32 %v3165_v30, %v2995_v29  ;;  %v1819_v31 = vpop.f32.mrb[25].mxu1  ;;  %v3394_v30 = vmov (!%p3010_p7), 1966171168  }
 0xb1d   : > { %v1820_v33 = vadd.f32 %v2995_v29, %v1819_v31  ;;  %v3166_v32 = vpop.f32.mrb[26].mxu1 }
 0xb1e   : > { %v1831_v34 = vadd.f32 %v3166_v32, %v2995_v29  ;;  %v1822_v4 = vpop.f32.mrb[27].mxu1  ;;  %v1836_v8 = vmax.f32 %v1828_v3, 0.0  ;;  %v2086_v3 = vunpack.c.l.s4 (!%p3010_p7), %v3394_v30  ;;  %v2058_v30 = vld [vmem:[%s3585_s28 + $0x28] sm:$0x7] (!%p3010_p7) }
 0xb1f   : > { %v1823_v35 = vadd.f32 %v2995_v29, %v1822_v4  ;;  %v1834_v40 = vmax.f32 %v1820_v33, 0.0 }
 0xb20   : > { %v1837_v39 = vmax.f32 %v1831_v34, 0.0  ;;  %v2087_v33 = vunpack.c.0.s8 (!%p3010_p7), %v2086_v3  ;;  %v3011_v34 = vld [vmem:[%s4238_s22] ss:$0 sm:$0xff] (!%p3010_p7) }
 0xb21   : > { %v1835_v41 = vmax.f32 %v1823_v35, 0.0  ;;  %v3012_v35 = vld [vmem:[%s4239_s25] ss:$0 sm:$0xff] (!%p3010_p7) }
 0xb22   : > { %v1839_v43 = vpack.c.bf16 %v1837_v39, %v1836_v8  ;;  %v3855_v39 = vsub.s32 (!%p3010_p7), %v2087_v33, %v3694_v36 }
 0xb23   : > { %v1838_v9 = vpack.c.bf16 %v1835_v41, %v1834_v40  ;;  %v2023_v41 = vld [vmem:[%s3580_s27] sm:$0xff] (!%p3010_p7) }
 0xb25   : > { %3175 = vmatprep.mubr.msk.bf16.mxu0 %vm753_vm1, %v1838_v9 }
 0xb26   : > { %3176 = vmatmul.mubr.msk.bf16.vlgmr.msra.gmra.mrb[20].mxu0 %vm753_vm1, %v1839_v43 }
 0xbf9   : > { %v3177_v45 = vpop.f32.mrb[20].mxu0 }
 0xbfa   : > { %v1931_v46 = vadd.f32 %v3177_v45, %v3003_v44  ;;  %v1922_v47 = vpop.f32.mrb[21].mxu0 }
 0xbfb   : > { %v1923_v48 = vadd.f32 %v3003_v44, %v1922_v47  ;;  %v3178_v49 = vpop.f32.mrb[22].mxu0  ;;  %1948 = sbr.rel (%p3010_p7) target bundleno = 3603 (0xe13), region = 108 }
 0xbfc   : > { %v1939_v50 = vadd.f32 %v1931_v46, %v1733_v25  ;;  %v1934_v51 = vadd.f32 %v3178_v49, %v3003_v44  ;;  %v1925_v20 = vpop.f32.mrb[23].mxu0  ;;  %v3864_v49 = vsub.s32 (!%p3010_p7), 0, %v3694_v36 }
 0xbfd   : > { %v1937_v21 = vadd.f32 %v1923_v48, %v1731_v16  ;;  %v1926_v52 = vadd.f32 %v3003_v44, %v1925_v20 }
 0xbfe   : > { %1943 = vst.msk [vmem:[#allocation2 + $0x10] sm:$0xff] %vm753_vm1, %v1939_v50  ;;  %v1940_v53 = vadd.f32 %v1934_v51, %v1734_v26  ;;  %v1957_v56 = vsel (!%p3010_p7), %vm753_vm1, %v1939_v50, 0.0  ;;  %v2024_v51 = vld [vmem:[%s3580_s27 + $0x8] sm:$0xff] (!%p3010_p7) }
 0xbff   : > { %1941 = vst.msk [vmem:[#allocation2] sm:$0xff] %vm753_vm1, %v1937_v21  ;;  %v1938_v54 = vadd.f32 %v1926_v52, %v1732_v17  ;;  %v1951_v55 = vsel (!%p3010_p7), %vm753_vm1, %v1937_v21, 0.0  ;;  %1958 = vadd.xlane.f32.xlu1 (!%p3010_p7), %v1957_v56 }
 0xc00   : > { %1944 = vst.msk [vmem:[#allocation2 + $0x18] sm:$0xff] %vm753_vm1, %v1940_v53  ;;  %1952 = vadd.xlane.f32.xlu0 (!%p3010_p7), %v1951_v55  ;;  %v1960_v58 = vsel (!%p3010_p7), %vm753_vm1, %v1940_v53, 0.0  ;;  %v2048_v55 = vld [vmem:[%s3585_s28] sm:$0x7] (!%p3010_p7) }
 0xc01   : > { %1942 = vst.msk [vmem:[#allocation2 + $0x8] sm:$0xff] %vm753_vm1, %v1938_v54  ;;  %v1954_v57 = vsel (!%p3010_p7), %vm753_vm1, %v1938_v54, 0.0 }
 0xc03   : > { %1961 = vadd.xlane.f32.xlu1 %v1960_v58 }
 0xc04   : > { %1955 = vadd.xlane.f32.xlu0 %v1954_v57 }
 0xc8c   : > { %v1959_v60 = vpop.xlane.xlu1 %1958 }
 0xc8d   : > { %v1953_v59 = vpop.xlane.xlu0 %1952  ;;  %v1965_v61 = vmul.f32 0.015625, %v1959_v60 }
 0xc8e   : > { %v1963_v42 = vmul.f32 0.015625, %v1953_v59 }
 0xc8f   : > { %v1969_v63 = vsub.f32 %v1939_v50, %v1965_v61 }
 0xc90   : > { %v1967_v62 = vsub.f32 %v1937_v21, %v1963_v42  ;;  %v1962_v1 = vpop.xlane.xlu1 %1961 }
 0xc91   : > { %v1956_v0 = vpop.xlane.xlu0 %1955  ;;  %v1966_v5 = vmul.f32 0.015625, %v1962_v1  ;;  %v1973_v7 = vmul.f32 %v1969_v63, %v1969_v63  ;;  %v2049_v1 = vld [vmem:[%s3585_s28 + $0x4] sm:$0x7] }
 0xc92   : > { %v1964_v2 = vmul.f32 0.015625, %v1956_v0  ;;  %v1971_v6 = vmul.f32 %v1967_v62, %v1967_v62 }
 0xc93   : > { %v1970_v11 = vsub.f32 %v1940_v53, %v1966_v5  ;;  %v1981_v13 = vsel %vm753_vm1, %v1973_v7, 0.0  ;;  %v2056_v7 = vld [vmem:[%s3585_s28 + $0x20] sm:$0x7] }
 0xc94   : > { %v1968_v10 = vsub.f32 %v1938_v54, %v1964_v2  ;;  %v1975_v12 = vsel %vm753_vm1, %v1971_v6, 0.0 }
 0xc95   : > { %1976 = vadd.xlane.f32.xlu0 %v1975_v12  ;;  %v1974_v15 = vmul.f32 %v1970_v11, %v1970_v11 }
 0xc96   : > { %v1972_v14 = vmul.f32 %v1968_v10, %v1968_v10 }
 0xc97   : > { %v1984_v17 = vsel %vm753_vm1, %v1974_v15, 0.0 }
 0xc98   : > { %v1978_v16 = vsel %vm753_vm1, %v1972_v14, 0.0 }
 0xc99   : > { %1982 = vadd.xlane.f32.xlu0 %v1981_v13  ;;  %1979 = vadd.xlane.f32.xlu1 %v1978_v16 }
 0xc9d   : > { %1985 = vadd.xlane.f32.xlu1 %v1984_v17 }
 0xd22   : > { %v1977_v18 = vpop.xlane.xlu0 %1976 }
 0xd23   : > { %v1987_v19 = vmul.f32 0.015625, %v1977_v18  ;;  %v2057_v18 = vld [vmem:[%s3585_s28 + $0x24] sm:$0x7] }
 0xd25   : > { %v1991_v22 = vadd.f32 1e-08, %v1987_v19  ;;  %v2064_v19 = vld [vmem:[%s3585_s28 + $0x40] sm:$0x7] }
 0xd26   : > { %v1980_v23 = vpop.xlane.xlu1 %1979  ;;  %v1983_v24 = vpop.xlane.xlu0 %1982 }
 0xd27   : > { %3306 = vrsqrt.f32 %v1991_v22  ;;  %v1988_v25 = vmul.f32 0.015625, %v1980_v23  ;;  %v1989_v26 = vmul.f32 0.015625, %v1983_v24 }
 0xd29   : > { %v1992_v27 = vadd.f32 1e-08, %v1988_v25  ;;  %v1993_v28 = vadd.f32 1e-08, %v1989_v26 }
 0xd2a   : > { %v1986_v38 = vpop.xlane.xlu1 %1985 }
 0xd2b   : > { %3308 = vrsqrt.f32 %v1992_v27  ;;  %v1990_v29 = vmul.f32 0.015625, %v1986_v38 }
 0xd2c   : > { %3310 = vrsqrt.f32 %v1993_v28 }
 0xd2d   : > { %v1994_v31 = vadd.f32 1e-08, %v1990_v29 }
 0xd2f   : > { %3312 = vrsqrt.f32 %v1994_v31 }
 0xd31   : > { %v3307_v32 = vpop.eup %3306 }
 0xd32   : > { %v1999_v4 = vmul.f32 %v3307_v32, %v1967_v62 }
 0xd34   : > { %v2009_v8 = vmul.f32 %v3011_v34, %v1999_v4 }
 0xd35   : > { %v3309_v40 = vpop.eup %3308 }
 0xd36   : > { %v3311_v43 = vpop.eup %3310  ;;  %v3858_v9 = vadd.f32 %v3012_v35, %v2009_v8  ;;  %v2000_v44 = vmul.f32 %v3309_v40, %v1968_v10 }
 0xd37   : > { %v2001_v45 = vmul.f32 %v3311_v43, %v1969_v63 }
 0xd38   : > { %v2027_v46 = vmul.f32 %v2023_v41, %v3858_v9  ;;  %v2010_v47 = vmul.f32 %v3011_v34, %v2000_v44  ;;  %v2091_v48 = vrot.slane %v3858_v9, %v3855_v39  ;;  %v2084_v38 = vcombine.high %v3858_v9, %v3858_v9  ;;  %v2065_v44 = vld [vmem:[%s3585_s28 + $0x44] sm:$0x7] }
 0xd39   : > { %v3313_v50 = vpop.eup %3312  ;;  %v2011_v20 = vmul.f32 %v3011_v34, %v2001_v45  ;;  %v2050_v45 = vld [vmem:[%s3585_s28 + $0x8] sm:$0x7] }
 0xd3a   : > { %v2002_v21 = vmul.f32 %v3313_v50, %v1970_v11  ;;  %v2031_v52 = vsel %vm753_vm1, %v2027_v46, 0.0  ;;  %v3868_v53 = vadd.f32 %v3012_v35, %v2010_v47  ;;  %v2107_v54 = vrot.slane %v2091_v48, %v3855_v39 }
 0xd3b   : > { %2032 = vadd.xlane.f32.xlu0 %v2031_v52  ;;  %v2099_v56 = vcombine.high %v2091_v48, %v2091_v48  ;;  %v3872_v57 = vadd.f32 %v3012_v35, %v2011_v20  ;;  %v3928_v47 = vrot.slane %v2084_v38, %v3855_v39  ;;  %v2068_v38 = vld [vmem:[%s3585_s28 + $0x50] sm:$0x7] }
 0xd3c   : > { %v2028_v58 = vmul.f32 %v2024_v51, %v3868_v53  ;;  %v2283_v59 = vrot.slane %v2107_v54, %v3864_v49  ;;  %v2140_v60 = vrot.slane %v3868_v53, %v3855_v39  ;;  %v2012_v62 = vmul.f32 %v3011_v34, %v2002_v21  ;;  %v2072_v34 = vld [vmem:[%s3585_s28 + $0x60] sm:$0x7] }
 0xd3d   : > { %v3879_v42 = vrot.slane %v2099_v56, %v3855_v39  ;;  %v2189_v61 = vrot.slane %v3872_v57, %v3855_v39  ;;  %v2129_v24 = vcombine.high %v2107_v54, %v2107_v54  ;;  %v2133_v9 = vcombine.high %v3868_v53, %v3868_v53 }
 0xd3e   : > { %v2034_v63 = vsel %vm753_vm1, %v2028_v58, 0.0  ;;  %v2440_v0 = vmul.f32 %v2283_v59, %v2048_v55  ;;  %v2156_v2 = vrot.slane %v2140_v60, %v3855_v39  ;;  %v2148_v5 = vcombine.high %v2140_v60, %v2140_v60  ;;  %v2073_v60 = vld [vmem:[%s3585_s28 + $0x64] sm:$0x7] }
 0xd3f   : > { %2035 = vadd.xlane.f32.xlu1 %v2034_v63  ;;  %v2287_v6 = vrot.slane %v3879_v42, %v3864_v49  ;;  %v2205_v10 = vrot.slane %v2189_v61, %v3855_v39  ;;  %v3890_v11 = vadd.f32 %v3012_v35, %v2012_v62  ;;  %v2197_v12 = vcombine.high %v2189_v61, %v2189_v61 }
 0xd40   : > { %v2473_v13 = vsel %vm2472_vm8, %v2440_v0, 0.0  ;;  %v2315_v14 = vrot.slane %v2156_v2, %v3864_v49  ;;  %v3895_v15 = vrot.slane %v2148_v5, %v3855_v39  ;;  %v2178_v16 = vcombine.high %v2156_v2, %v2156_v2  ;;  %v2066_v0 = vld [vmem:[%s3585_s28 + $0x48] sm:$0x7] }
 0xd41   : > { %2474 = vadd.xlane.f32.xlu0 %v2473_v13  ;;  %v2441_v17 = vmul.f32 %v2287_v6, %v2049_v1  ;;  %v2347_v22 = vrot.slane %v2205_v10, %v3864_v49  ;;  %v2238_v23 = vrot.slane %v3890_v11, %v3855_v39  ;;  %v3906_v28 = vrot.slane %v2197_v12, %v3855_v39  ;;  %v2074_v13 = vld [vmem:[%s3585_s28 + $0x68] sm:$0x7] }
 0xd42   : > { %v2448_v25 = vmul.f32 %v2315_v14, %v2056_v7  ;;  %v2319_v26 = vrot.slane %v3895_v15, %v3864_v49  ;;  %v2323_v27 = vrot.slane %v2178_v16, %v3864_v49  ;;  %v2291_v43 = vrot.slane %v2129_v24, %v3864_v49 }
 0xd43   : > { %v2476_v29 = vsel %vm2472_vm8, %v2441_v17, 0.0  ;;  %v2254_v3 = vrot.slane %v2238_v23, %v3855_v39  ;;  %v2456_v32 = vmul.f32 %v2347_v22, %v2064_v19  ;;  %v2246_v35 = vcombine.high %v2238_v23, %v2238_v23  ;;  %v2052_v17 = vld [vmem:[%s3585_s28 + $0x10] sm:$0x7] }
 0xd44   : > { %2477 = vadd.xlane.f32.xlu1 %v2476_v29  ;;  %v2497_v31 = vsel %vm2472_vm8, %v2448_v25, 0.0  ;;  %v2449_v33 = vmul.f32 %v2319_v26, %v2057_v18  ;;  %v2450_v40 = vmul.f32 %v2323_v27, %v2058_v30  ;;  %v2351_v41 = vrot.slane %v3906_v28, %v3864_v49  ;;  %v2060_v27 = vld [vmem:[%s3585_s28 + $0x30] sm:$0x7] }
 0xd45   : > { %2498 = vadd.xlane.f32.xlu0 %v2497_v31  ;;  %v2379_v4 = vrot.slane %v2254_v3, %v3864_v49  ;;  %v3925_v46 = vrot.slane %v2246_v35, %v3855_v39  ;;  %v2521_v48 = vsel %vm2472_vm8, %v2456_v32, 0.0  ;;  %v2227_v51 = vcombine.high %v2205_v10, %v2205_v10  ;;  %v2076_v35 = vld [vmem:[%s3585_s28 + $0x70] sm:$0x7] }
 0xd46   : > { %v2500_v8 = vsel %vm2472_vm8, %v2449_v33, 0.0  ;;  %v2182_v20 = vcombine.high %v3872_v57, %v3872_v57  ;;  %v2503_v21 = vsel %vm2472_vm8, %v2450_v40, 0.0  ;;  %v2457_v52 = vmul.f32 %v2351_v41, %v2065_v44  ;;  %v2051_v33 = vld [vmem:[%s3585_s28 + $0xc] sm:$0x7] }
 0xd47   : > { %v2464_v50 = vmul.f32 %v2379_v4, %v2072_v34  ;;  %v2442_v53 = vmul.f32 %v2291_v43, %v2050_v45  ;;  %v2383_v54 = vrot.slane %v3925_v46, %v3864_v49  ;;  %v2276_v55 = vcombine.high %v2254_v3, %v2254_v3 }
 0xd48   : > { %2501 = vadd.xlane.f32.xlu1 %v2500_v8  ;;  %v3937_v56 = vrot.slane %v2133_v9, %v3855_v39  ;;  %v2231_v58 = vcombine.high %v3890_v11, %v3890_v11  ;;  %v2355_v61 = vrot.slane %v2227_v51, %v3864_v49  ;;  %v3946_v62 = vrot.slane %v3928_v47, %v3855_v39 }
 0xd49   : > { %2522 = vadd.xlane.f32.xlu0 %v2521_v48  ;;  %v2545_v59 = vsel %vm2472_vm8, %v2464_v50, 0.0  ;;  %v3949_v63 = vrot.slane %v2182_v20, %v3855_v39  ;;  %v2524_v1 = vsel %vm2472_vm8, %v2457_v52, 0.0  ;;  %v2465_v2 = vmul.f32 %v2383_v54, %v2073_v60  ;;  %v2059_v48 = vld [vmem:[%s3585_s28 + $0x2c] sm:$0x7]  ;;  %v2053_v60 = vld [vmem:[%s3585_s28 + $0x14] sm:$0x7] }
 0xd4a   : > { %v2387_v5 = vrot.slane %v2276_v55, %v3864_v49  ;;  %v3956_v6 = vrot.slane %v3937_v56, %v3855_v39  ;;  %v3959_v7 = vrot.slane %v2231_v58, %v3855_v39  ;;  %v2479_v10 = vsel %vm2472_vm8, %v2442_v53, 0.0  ;;  %v2075_v53 = vld [vmem:[%s3585_s28 + $0x6c] sm:$0x7] }
 0xd4b   : > { %v2458_v12 = vmul.f32 %v2355_v61, %v2066_v0  ;;  %v2299_v14 = vrot.slane %v3946_v62, %v3864_v49  ;;  %v3967_v16 = vrot.slane %v3949_v63, %v3855_v39  ;;  %v2131_v18 = vcombine.high %v3879_v42, %v3879_v42 }
 0xd4c   : > { %2504 = vadd.xlane.f32.xlu1 %v2503_v21  ;;  %v2548_v19 = vsel %vm2472_vm8, %v2465_v2, 0.0  ;;  %v2466_v22 = vmul.f32 %v2387_v5, %v2074_v13  ;;  %v2331_v23 = vrot.slane %v3956_v6, %v3864_v49  ;;  %v3977_v24 = vrot.slane %v3959_v7, %v3855_v39 }
 0xd4d   : > { %2546 = vadd.xlane.f32.xlu0 %v2545_v59  ;;  %v2527_v25 = vsel %vm2472_vm8, %v2458_v12, 0.0  ;;  %v2444_v26 = vmul.f32 %v2299_v14, %v2052_v17  ;;  %v2363_v42 = vrot.slane %v3967_v16, %v3864_v49  ;;  %v2295_v29 = vrot.slane %v2131_v18, %v3864_v49  ;;  %v2061_v12 = vld [vmem:[%s3585_s28 + $0x34] sm:$0x7]  ;;  %v2054_v14 = vld [vmem:[%s3585_s28 + $0x18] sm:$0x7] }
 0xd4e   : > { %v2551_v30 = vsel %vm2472_vm8, %v2466_v22, 0.0  ;;  %v2452_v3 = vmul.f32 %v2331_v23, %v2060_v27  ;;  %v2395_v31 = vrot.slane %v3977_v24, %v3864_v49  ;;  %v2180_v32 = vcombine.high %v3895_v15, %v3895_v15  ;;  %v2062_v23 = vld [vmem:[%s3585_s28 + $0x38] sm:$0x7]  ;;  %v2069_v27 = vld [vmem:[%s3585_s28 + $0x54] sm:$0x7] }
 0xd4f   : > { %v2485_v34 = vsel %vm2472_vm8, %v2444_v26, 0.0  ;;  %v2460_v4 = vmul.f32 %v2363_v42, %v2068_v38  ;;  %v2229_v8 = vcombine.high %v3906_v28, %v3906_v28  ;;  %v2100_v40 = vcombine.high %v3928_v47, %v3928_v47 }
 0xd50   : > { %2525 = vadd.xlane.f32.xlu1 %v2524_v1  ;;  %v2443_v41 = vmul.f32 %v2295_v29, %v2051_v33  ;;  %v2278_v43 = vcombine.high %v3925_v46, %v3925_v46  ;;  %v2509_v15 = vsel %vm2472_vm8, %v2452_v3, 0.0  ;;  %v2468_v9 = vmul.f32 %v2395_v31, %v2076_v35  ;;  %v2067_v46 = vld [vmem:[%s3585_s28 + $0x4c] sm:$0x7]  ;;  %v2077_v31 = vld [vmem:[%s3585_s28 + $0x74] sm:$0x7] }
 0xd51   : > { %2480 = vadd.xlane.f32.xlu0 %v2479_v10  ;;  %v2327_v44 = vrot.slane %v2180_v32, %v3864_v49  ;;  %v2149_v45 = vcombine.high %v3937_v56, %v3937_v56  ;;  %v2533_v28 = vsel %vm2472_vm8, %v2460_v4, 0.0  ;;  %v2359_v47 = vrot.slane %v2229_v8, %v3864_v49  ;;  %v2070_v32 = vld [vmem:[%s3585_s28 + $0x58] sm:$0x7] }
 0xd52   : > { %v2128_v50 = vrot.slane %v2100_v40, %v3855_v39  ;;  %v2391_v51 = vrot.slane %v2278_v43, %v3864_v49  ;;  %v2557_v20 = vsel %vm2472_vm8, %v2468_v9, 0.0  ;;  %v2482_v21 = vsel %vm2472_vm8, %v2443_v41, 0.0  ;;  %v2078_v41 = vld [vmem:[%s3585_s28 + $0x78] sm:$0x7]  ;;  %v2055_v9 = vld [vmem:[%s3585_s28 + $0x1c] sm:$0x7] }
 0xd53   : > { %v2451_v52 = vmul.f32 %v2327_v44, %v2059_v48  ;;  %v2177_v54 = vrot.slane %v2149_v45, %v3855_v39  ;;  %v2459_v55 = vmul.f32 %v2359_v47, %v2067_v46  ;;  %v2130_v58 = vcombine.high %v3946_v62, %v3946_v62  ;;  %v2063_v46 = vld [vmem:[%s3585_s28 + $0x3c] sm:$0x7] }
 0xd54   : > { %2549 = vadd.xlane.f32.xlu1 %v2548_v19  ;;  %v2303_v56 = vrot.slane %v2128_v50, %v3864_v49  ;;  %v2198_v59 = vcombine.high %v3949_v63, %v3949_v63  ;;  %v2467_v61 = vmul.f32 %v2391_v51, %v2075_v53  ;;  %v2179_v2 = vcombine.high %v3956_v6, %v3956_v6 }
 0xd55   : > { %2528 = vadd.xlane.f32.xlu0 %v2527_v25  ;;  %v2506_v0 = vsel %vm2472_vm8, %v2451_v52, 0.0  ;;  %v2335_v1 = vrot.slane %v2177_v54, %v3864_v49  ;;  %v2247_v5 = vcombine.high %v3959_v7, %v3959_v7  ;;  %v2530_v62 = vsel %vm2472_vm8, %v2459_v55, 0.0 }
 0xd56   : > { %v2445_v10 = vmul.f32 %v2303_v56, %v2053_v60  ;;  %v2307_v63 = vrot.slane %v2130_v58, %v3864_v49  ;;  %v2226_v13 = vrot.slane %v2198_v59, %v3855_v39  ;;  %v2554_v17 = vsel %vm2472_vm8, %v2467_v61, 0.0  ;;  %v2079_v56 = vld [vmem:[%s3585_s28 + $0x7c] sm:$0x7]  ;;  %v2025_v58 = vld [vmem:[%s3580_s27 + $0x10] sm:$0xff] }
 0xd57   : > { %v2453_v18 = vmul.f32 %v2335_v1, %v2061_v12  ;;  %v2339_v6 = vrot.slane %v2179_v2, %v3864_v49  ;;  %v2275_v7 = vrot.slane %v2247_v5, %v3855_v39  ;;  %v2228_v26 = vcombine.high %v3967_v16, %v3967_v16  ;;  %v2026_v1 = vld [vmem:[%s3580_s27 + $0x18] sm:$0xff] }
 0xd58   : > { %2552 = vadd.xlane.f32.xlu1 %v2551_v30  ;;  %v2488_v19 = vsel %vm2472_vm8, %v2445_v10, 0.0  ;;  %v2446_v22 = vmul.f32 %v2307_v63, %v2054_v14  ;;  %v2367_v25 = vrot.slane %v2226_v13, %v3864_v49  ;;  %v2277_v39 = vcombine.high %v3977_v24, %v3977_v24 }
 0xd59   : > { %2486 = vadd.xlane.f32.xlu0 %v2485_v34  ;;  %v2512_v42 = vsel %vm2472_vm8, %v2453_v18, 0.0  ;;  %v2454_v38 = vmul.f32 %v2339_v6, %v2062_v23  ;;  %v2399_v29 = vrot.slane %v2275_v7, %v3864_v49  ;;  %v2371_v33 = vrot.slane %v2228_v26, %v3864_v49 }
 0xd5a   : > { %v2491_v30 = vsel %vm2472_vm8, %v2446_v22, 0.0  ;;  %v2461_v3 = vmul.f32 %v2367_v25, %v2069_v27  ;;  %v2132_v16 = vcombine.high %v2128_v50, %v2128_v50  ;;  %v2403_v35 = vrot.slane %v2277_v39, %v3864_v49 }
 0xd5b   : > { %v2515_v34 = vsel %vm2472_vm8, %v2454_v38, 0.0  ;;  %v2469_v4 = vmul.f32 %v2399_v29, %v2077_v31  ;;  %v2181_v8 = vcombine.high %v2177_v54, %v2177_v54  ;;  %v2462_v40 = vmul.f32 %v2371_v33, %v2070_v32 }
 0xd5c   : > { %2510 = vadd.xlane.f32.xlu1 %v2509_v15  ;;  %v2536_v24 = vsel %vm2472_vm8, %v2461_v3, 0.0  ;;  %v2311_v43 = vrot.slane %v2132_v16, %v3864_v49  ;;  %v2230_v15 = vcombine.high %v2226_v13, %v2226_v13  ;;  %v2470_v45 = vmul.f32 %v2403_v35, %v2078_v41 }
 0xd5d   : > { %2534 = vadd.xlane.f32.xlu0 %v2533_v28  ;;  %v2560_v44 = vsel %vm2472_vm8, %v2469_v4, 0.0  ;;  %v2343_v28 = vrot.slane %v2181_v8, %v3864_v49  ;;  %v2279_v48 = vcombine.high %v2275_v7, %v2275_v7  ;;  %v2539_v47 = vsel %vm2472_vm8, %v2462_v40, 0.0 }
 0xd5e   : > { %v2447_v50 = vmul.f32 %v2311_v43, %v2055_v9  ;;  %v2375_v51 = vrot.slane %v2230_v15, %v3864_v49  ;;  %v2030_v2 = vmul.f32 %v2026_v1, %v3890_v11  ;;  %v4090_v33 = vsub.s32 %v3696_v37, %v3694_v36 }
 0xd5f   : > { %v2455_v52 = vmul.f32 %v2343_v28, %v2063_v46  ;;  %v2407_v53 = vrot.slane %v2279_v48, %v3864_v49 }
 0xd60   : > { %2558 = vadd.xlane.f32.xlu1 %v2557_v20  ;;  %v2071_v20 = vld [vmem:[%s3585_s28 + $0x5c] sm:$0x7]  ;;  %v2494_v54 = vsel %vm2472_vm8, %v2447_v50, 0.0 }
 0xd61   : > { %2483 = vadd.xlane.f32.xlu0 %v2482_v21  ;;  %v2563_v21 = vsel %vm2472_vm8, %v2470_v45, 0.0  ;;  %v2463_v55 = vmul.f32 %v2375_v51, %v2071_v20  ;;  %v2518_v59 = vsel %vm2472_vm8, %v2455_v52, 0.0  ;;  %v2471_v60 = vmul.f32 %v2407_v53, %v2079_v56 }
 0xd63   : > { %v2542_v61 = vsel %vm2472_vm8, %v2463_v55, 0.0  ;;  %v2566_v49 = vsel %vm2472_vm8, %v2471_v60, 0.0 }
 0xd64   : > { %2507 = vadd.xlane.f32.xlu1 %v2506_v0  ;;  %v2029_v0 = vmul.f32 %v2025_v58, %v3872_v57 }
 0xd65   : > { %2531 = vadd.xlane.f32.xlu0 %v2530_v62  ;;  %v2040_v62 = vsel %vm753_vm1, %v2030_v2, 0.0 }
 0xd66   : > { %v2037_v5 = vsel %vm753_vm1, %v2029_v0, 0.0  ;;  %vm2768_vm1 = vcmask 23552  }
 0xd68   : > { %2555 = vadd.xlane.f32.xlu1 %v2554_v17 }
 0xd69   : > { %2489 = vadd.xlane.f32.xlu0 %v2488_v19 }
 0xd6c   : > { %2513 = vadd.xlane.f32.xlu1 %v2512_v42 }
 0xd6d   : > { %2492 = vadd.xlane.f32.xlu0 %v2491_v30 }
 0xd70   : > { %2516 = vadd.xlane.f32.xlu1 %v2515_v34 }
 0xd71   : > { %2537 = vadd.xlane.f32.xlu0 %v2536_v24 }
 0xd74   : > { %2561 = vadd.xlane.f32.xlu1 %v2560_v44 }
 0xd75   : > { %2540 = vadd.xlane.f32.xlu0 %v2539_v47 }
 0xd78   : > { %2564 = vadd.xlane.f32.xlu1 %v2563_v21 }
 0xd79   : > { %2495 = vadd.xlane.f32.xlu0 %v2494_v54 }
 0xd7c   : > { %2519 = vadd.xlane.f32.xlu1 %v2518_v59 }
 0xd7d   : > { %2543 = vadd.xlane.f32.xlu0 %v2542_v61 }
 0xd80   : > { %2567 = vadd.xlane.f32.xlu1 %v2566_v49 }
 0xd81   : > { %2038 = vadd.xlane.f32.xlu0 %v2037_v5 }
 0xd84   : > { %2041 = vadd.xlane.f32.xlu1 %v2040_v62 }
 0xdc8   : > { %v2033_v10 = vpop.xlane.xlu0 %2032 }
 0xdc9   : > { %2044 = vst.msk [vmem:[%s3590_s15] sm:$0xff] %vm2043_vm9, %v2033_v10 }
 0xdcc   : > { %v2036_v12 = vpop.xlane.xlu1 %2035 }
 0xdcd   : > { %2045 = vst.msk [vmem:[%s3590_s15 + $0x8] sm:$0xff] %vm2043_vm9, %v2036_v12 }
 0xdce   : > { %v2475_v57 = vpop.xlane.xlu0 %2474 }
 0xdcf   : > { %v2604_v8 = vrot.slane %v2475_v57, %v4090_v33 }
 0xdd1   : > { %v2478_v63 = vpop.xlane.xlu1 %2477 }
 0xdd2   : > { %v2499_v13 = vpop.xlane.xlu0 %2498  ;;  %v2608_v32 = vrot.slane %v2478_v63, %v4090_v33 }
 0xdd3   : > { %v2636_v36 = vrot.slane %v2499_v13, %v4090_v33 }
 0xdd4   : > { %v2730_v41 = vsel %vm2729_vm10, %v2608_v32, %v2604_v8 }
 0xdd5   : > { %v2502_v14 = vpop.xlane.xlu1 %2501 }
 0xdd6   : > { %v2523_v17 = vpop.xlane.xlu0 %2522  ;;  %v2640_v34 = vrot.slane %v2502_v14, %v4090_v33 }
 0xdd7   : > { %v2668_v44 = vrot.slane %v2523_v17, %v4090_v33 }
 0xdd8   : > { %v2743_v9 = vsel %vm2729_vm10, %v2640_v34, %v2636_v36 }
 0xdd9   : > { %v2505_v11 = vpop.xlane.xlu1 %2504 }
 0xdda   : > { %v2547_v18 = vpop.xlane.xlu0 %2546  ;;  %v2644_v37 = vrot.slane %v2505_v11, %v4090_v33 }
 0xddb   : > { %v2700_v47 = vrot.slane %v2547_v18, %v4090_v33 }
 0xddc   : > { %v2744_v21 = vsel %vm2731_vm11, %v2644_v37, %v2743_v9 }
 0xddd   : > { %v2526_v6 = vpop.xlane.xlu1 %2525 }
 0xdde   : > { %v2481_v7 = vpop.xlane.xlu0 %2480  ;;  %v2672_v43 = vrot.slane %v2526_v6, %v4090_v33 }
 0xddf   : > { %v2612_v4 = vrot.slane %v2481_v7, %v4090_v33 }
 0xde0   : > { %v2750_v54 = vsel %vm2729_vm10, %v2672_v43, %v2668_v44 }
 0xde1   : > { %v2550_v19 = vpop.xlane.xlu1 %2549  ;;  %v2732_v45 = vsel %vm2731_vm11, %v2612_v4, %v2730_v41 }
 0xde2   : > { %v2529_v22 = vpop.xlane.xlu0 %2528  ;;  %v2704_v15 = vrot.slane %v2550_v19, %v4090_v33 }
 0xde3   : > { %v2676_v28 = vrot.slane %v2529_v22, %v4090_v33 }
 0xde4   : > { %v2757_v55 = vsel %vm2729_vm10, %v2704_v15, %v2700_v47 }
 0xde5   : > { %v4076_v23 = vpop.xlane.xlu1 %2552  ;;  %v2751_v59 = vsel %vm2731_vm11, %v2676_v28, %v2750_v54 }
 0xde6   : > { %v2487_v25 = vpop.xlane.xlu0 %2486  ;;  %v2708_v56 = vrot.slane %v4076_v23, %v4090_v33 }
 0xde7   : > { %v2620_v52 = vrot.slane %v2487_v25, %v4090_v33 }
 0xde8   : > { %v2758_v14 = vsel %vm2731_vm11, %v2708_v56, %v2757_v55 }
 0xde9   : > { %v4078_v26 = vpop.xlane.xlu1 %2510 }
 0xdea   : > { %v4080_v27 = vpop.xlane.xlu0 %2534  ;;  %v2652_v60 = vrot.slane %v4078_v26, %v4090_v33 }
 0xdeb   : > { %v2684_v61 = vrot.slane %v4080_v27, %v4090_v33 }
 0xded   : > { %v4082_v42 = vpop.xlane.xlu1 %2558 }
 0xdee   : > { %v2484_v38 = vpop.xlane.xlu0 %2483  ;;  %v2716_v18 = vrot.slane %v4082_v42, %v4090_v33 }
 0xdef   : > { %v2616_v24 = vrot.slane %v2484_v38, %v4090_v33 }
 0xdf1   : > { %v2508_v29 = vpop.xlane.xlu1 %2507  ;;  %v2734_v50 = vsel %vm2733_vm12, %v2616_v24, %v2732_v45 }
 0xdf2   : > { %v2532_v39 = vpop.xlane.xlu0 %2531  ;;  %v2648_v46 = vrot.slane %v2508_v29, %v4090_v33  ;;  %v2736_v0 = vsel %vm2735_vm13, %v2620_v52, %v2734_v50 }
 0xdf3   : > { %v2680_v51 = vrot.slane %v2532_v39, %v4090_v33 }
 0xdf4   : > { %v2745_v49 = vsel %vm2733_vm12, %v2648_v46, %v2744_v21 }
 0xdf5   : > { %v4084_v30 = vpop.xlane.xlu1 %2555  ;;  %v2752_v2 = vsel %vm2733_vm12, %v2680_v51, %v2751_v59  ;;  %v2746_v6 = vsel %vm2735_vm13, %v2652_v60, %v2745_v49 }
 0xdf6   : > { %v2490_v3 = vpop.xlane.xlu0 %2489  ;;  %v2712_v5 = vrot.slane %v4084_v30, %v4090_v33  ;;  %v2753_v7 = vsel %vm2735_vm13, %v2684_v61, %v2752_v2 }
 0xdf7   : > { %v2624_v53 = vrot.slane %v2490_v3, %v4090_v33 }
 0xdf8   : > { %v2759_v23 = vsel %vm2733_vm12, %v2712_v5, %v2758_v14 }
 0xdf9   : > { %v4086_v31 = vpop.xlane.xlu1 %2513  ;;  %v2738_v12 = vsel %vm2737_vm14, %v2624_v53, %v2736_v0 }
 0xdfa   : > { %v2493_v16 = vpop.xlane.xlu0 %2492  ;;  %v2656_v62 = vrot.slane %v4086_v31, %v4090_v33 }
 0xdfb   : > { %v2628_v58 = vrot.slane %v2493_v16, %v4090_v33  ;;  %v2760_v16 = vsel %vm2735_vm13, %v2716_v18, %v2759_v23 }
 0xdfc   : > { %v2747_v25 = vsel %vm2737_vm14, %v2656_v62, %v2746_v6 }
 0xdfd   : > { %v2517_v35 = vpop.xlane.xlu1 %2516  ;;  %v2740_v17 = vsel %vm2739_vm15, %v2628_v58, %v2738_v12 }
 0xdfe   : > { %v2538_v40 = vpop.xlane.xlu0 %2537  ;;  %v2660_v57 = vrot.slane %v2517_v35, %v4090_v33 }
 0xdff   : > { %v2688_v63 = vrot.slane %v2538_v40, %v4090_v33 }
 0xe00   : > { %v2748_v38 = vsel %vm2739_vm15, %v2660_v57, %v2747_v25 }
 0xe01   : > { %v2562_v48 = vpop.xlane.xlu1 %2561  ;;  %v2754_v29 = vsel %vm2737_vm14, %v2688_v63, %v2753_v7 }
 0xe02   : > { %v2541_v20 = vpop.xlane.xlu0 %2540  ;;  %v2720_v26 = vrot.slane %v2562_v48, %v4090_v33 }
 0xe03   : > { %v2692_v11 = vrot.slane %v2541_v20, %v4090_v33 }
 0xe04   : > { %v2761_v4 = vsel %vm2737_vm14, %v2720_v26, %v2760_v16 }
 0xe05   : > { %v2565_v1 = vpop.xlane.xlu1 %2564  ;;  %v2755_v3 = vsel %vm2739_vm15, %v2692_v11, %v2754_v29 }
 0xe06   : > { %v2496_v10 = vpop.xlane.xlu0 %2495  ;;  %v2724_v39 = vrot.slane %v2565_v1, %v4090_v33 }
 0xe07   : > { %v2632_v13 = vrot.slane %v2496_v10, %v4090_v33 }
 0xe08   : > { %v2762_v24 = vsel %vm2739_vm15, %v2724_v39, %v2761_v4 }
 0xe09   : > { %v2742_v19 = vsel %vm2741_vm0, %v2632_v13, %v2740_v17  ;;  %v2520_v22 = vpop.xlane.xlu1 %2519 }
 0xe0a   : > { %2769 = vst.msk [vmem:[%s3595_s30] sm:$0xff] %vm2768_vm1, %v2742_v19  ;;  %v2664_v27 = vrot.slane %v2520_v22, %v4090_v33  ;;  %v2544_v42 = vpop.xlane.xlu0 %2543 }
 0xe0b   : > { %v2696_v30 = vrot.slane %v2544_v42, %v4090_v33 }
 0xe0c   : > { %v2749_v31 = vsel %vm2741_vm0, %v2664_v27, %v2748_v38 }
 0xe0d   : > { %2770 = vst.msk [vmem:[%s3595_s30 + $0x8] sm:$0xff] %vm2768_vm1, %v2749_v31  ;;  %v2756_v32 = vsel %vm2741_vm0, %v2696_v30, %v2755_v3  ;;  %v2568_v34 = vpop.xlane.xlu1 %2567 }
 0xe0e   : > { %2771 = vst.msk [vmem:[%s3595_s30 + $0x10] sm:$0xff] %vm2768_vm1, %v2756_v32  ;;  %v2728_v35 = vrot.slane %v2568_v34, %v4090_v33  ;;  %v2039_v8 = vpop.xlane.xlu0 %2038 }
 0xe0f   : > { %2046 = vst.msk [vmem:[%s3590_s15 + $0x10] sm:$0xff] %vm2043_vm9, %v2039_v8 }
 0xe10   : > { %v2763_v40 = vsel %vm2741_vm0, %v2728_v35, %v2762_v24 }
 0xe11   : > { %2772 = vst.msk [vmem:[%s3595_s30 + $0x18] sm:$0xff] %vm2768_vm1, %v2763_v40  ;;  %v2042_v36 = vpop.xlane.xlu1 %2041 }
 0xe12   : > { %2047 = vst.msk [vmem:[%s3590_s15 + $0x18] sm:$0xff] %vm2043_vm9, %v2042_v36 }
 0xe13 PF: > { %s4240_s27 = sld [smem:[#allocation9_spill]]  ;;  %s4241_s1 = sld [smem:[#allocation7_spill]] }
 0xe14   : > { %s4242_s22 = sld [smem:[#allocation8_spill]]  ;;  %s4243_s23 = sld [smem:[#allocation10_spill]] }
 0xe15   : > { %s4244_s24 = sld [smem:[#allocation11_spill]] }
 0xe19   : > { %s32_s2 = sadd.s32 1, %s4240_s27  }
 0xe1a   : > { %p29_p9 = scmp.ge.s32.totalorder %s32_s2, 6  }
 0xe1c   :  { %31 = sbr.rel (!%p29_p9) target bundleno = 12 (0xc), region = 171 }
 0xe23   :  { %2816 = vsyncpa [#allocation5], 1 }
 0xe24   :  { %2818 = vsyncpa [#allocation5 + $0x1], 1 }

</bundles_post_ra>
